<compile_context>
chip_gen: v5e
topology: v5e:2x2
jax: 0.10.0
libtpu: 0.0.40
codegen_flags: <defaults>
</compile_context>

<pallas_src>
import functools

import jax
import jax.numpy as jnp
from jax.experimental import pallas as pl
from jax.experimental.pallas import tpu as pltpu


def _round_up(x, m):
    return ((x + m - 1) // m) * m


def _num_out_tiles():
    # 2-way N split only on chips with 2 TensorCores per chip (v7x).
    # TODO(synk): verify in xprof that ("parallel", ...) actually engages both TCs on v7x;
    # if not, switch that axis to pltpu.CORE_PARALLEL. Substring match is brittle but safe
    # (falls back to a single tile).
    try:
        kind = jax.devices()[0].device_kind.lower()
    except Exception:
        kind = ""
    return 2 if "v7" in kind else 1


def prepare_projector_params(w_t, b):
    """One-time parameter prep (hoisted out of the per-call path).

    w_t: (in_dim, out_dim) f32  (transpose of the PyTorch (out_dim, in_dim) weight)
    b:   (out_dim,) f32
    Returns:
      w_p: (K_pad, N_pad) bf16  -- zero-padded, lane/sublane aligned
      b_p: (8, N_pad)   f32     -- bias pre-broadcast to 8 sublanes (unmasked load)
    """
    in_dim, out_dim = w_t.shape
    k_pad = _round_up(in_dim, 128)
    n_pad = _round_up(out_dim, 128)
    w_p = jnp.pad(w_t, ((0, k_pad - in_dim), (0, n_pad - out_dim))).astype(jnp.bfloat16)
    b_row = jnp.pad(b, (0, n_pad - out_dim)).astype(jnp.float32)
    b_p = jnp.tile(b_row[None, :], (8, 1))
    return w_p, b_p


def _linear_kernel(x_ref, w_ref, b_ref, o_ref):
    # x: (TILE_M, K_pad) f32 -> bf16 cast on the VPU (activations are tiny; cast is free).
    x = x_ref[...].astype(jnp.bfloat16)
    # MXU matmul with f32 accumulation.
    acc = jnp.dot(x, w_ref[...], preferred_element_type=jnp.float32)
    # Bias: full (8, TILE_N) unmasked load, rows are identical copies; add in f32.
    bias = b_ref[...]
    o_ref[...] = (acc + bias[:1, :]).astype(o_ref.dtype)


def projector_forward(x, w_p, b_p, *, out_dim, out_tiles=None, unpad=True):
    """y = x @ W^T + b using pre-prepared (padded, bf16) parameters.

    x:   (B, in_dim) f32
    w_p: (K_pad, N_pad) bf16 from prepare_projector_params
    b_p: (8, N_pad) f32     from prepare_projector_params
    Returns (B, out_dim) f32, or the padded (B_pad, N_pad) buffer if unpad=False
    (lets a downstream consumer slice lazily and avoid an extra HBM round-trip).
    """
    B, in_dim = x.shape
    k_pad, n_pad = w_p.shape

    # Batch tiling: single block for small batches (no extra grid steps); 256-row tiles
    # for large batches (MXU-friendly on v6e/v7x, bounds VMEM on all generations).
    b_pad = _round_up(B, 16)  # bf16 vreg packs 16 sublanes
    tile_m = b_pad if b_pad <= 512 else 256
    b_pad = _round_up(b_pad, tile_m)
    m_tiles = b_pad // tile_m

    # Only per-call prep: a single f32 pad of the activation (no separate cast pass —
    # the bf16 cast happens inside the kernel). Skipped entirely when already aligned.
    if (b_pad, k_pad) != (B, in_dim):
        x = jnp.pad(x, ((0, b_pad - B), (0, k_pad - in_dim)))

    if out_tiles is None:
        out_tiles = _num_out_tiles()
    if n_pad % (128 * out_tiles) != 0:
        out_tiles = 1
    tile_n = n_pad // out_tiles

    cost = pl.CostEstimate(
        flops=2 * b_pad * k_pad * n_pad,
        transcendentals=0,
        bytes_accessed=x.size * 4 + w_p.size * 2 + b_p.size * 4 + b_pad * n_pad * 4,
    )

    out_padded = pl.pallas_call(
        _linear_kernel,
        out_shape=jax.ShapeDtypeStruct((b_pad, n_pad), jnp.float32),
        grid_spec=pltpu.PrefetchScalarGridSpec(
            num_scalar_prefetch=0,
            # N (weight) axis outermost so the weight block stays VMEM-resident across
            # the batch tiles (no weight re-DMA per M step).
            grid=(out_tiles, m_tiles),
            in_specs=[
                pl.BlockSpec((tile_m, k_pad), lambda j, i: (i, 0)),   # activations (f32)
                pl.BlockSpec((k_pad, tile_n), lambda j, i: (0, j)),   # bf16 weight slab
                pl.BlockSpec((8, tile_n), lambda j, i: (0, j)),       # f32 bias (8 rows)
            ],
            out_specs=pl.BlockSpec((tile_m, tile_n), lambda j, i: (i, j)),
        ),
        compiler_params=pltpu.CompilerParams(
            # Both axes independent; on v7x the leading N axis shards across the two
            # TensorCores. Near no-op on single-TC chips (v5e/v6e).
            dimension_semantics=("parallel", "parallel"),
        ),
        cost_estimate=cost,
    )(x, w_p, b_p)

    if not unpad:
        return out_padded
    if b_pad == B and n_pad == out_dim:
        return out_padded
    return out_padded[:B, :out_dim]


if __name__ == "__main__":
    # Module defaults: in_dim=750, out_dim=500. Small batch.
    in_dim, out_dim, batch = 750, 500, 8

    key = jax.random.PRNGKey(0)
    kx, kw, kb = jax.random.split(key, 3)

    # Deterministic init matching nn.Linear's U(-1/sqrt(in_dim), 1/sqrt(in_dim)).
    bound = 1.0 / (in_dim ** 0.5)
    # PyTorch weight is (out_dim, in_dim); we store its transpose (in_dim, out_dim).
    w_t = jax.random.uniform(kw, (in_dim, out_dim), jnp.float32, -bound, bound)
    b = jax.random.uniform(kb, (out_dim,), jnp.float32, -bound, bound)
    x = jax.random.normal(kx, (batch, in_dim), jnp.float32)

    # One-time parameter prep (would live at module-init / checkpoint-load time).
    w_p, b_p = prepare_projector_params(w_t, b)

    fwd = jax.jit(functools.partial(projector_forward, out_dim=out_dim))
    out = jax.block_until_ready(fwd(x, w_p, b_p))
    assert out.shape == (batch, out_dim)

    # Reference 1: same precision (bf16 inputs, f32 accumulate) — tight match.
    ref_bf16 = jnp.dot(x.astype(jnp.bfloat16), w_t.astype(jnp.bfloat16),
                       preferred_element_type=jnp.float32) + b
    assert jnp.allclose(out, ref_bf16, atol=1e-3, rtol=1e-3)

    # Reference 2: full f32 module semantics — loose tolerance for bf16 input rounding.
    ref_f32 = x @ w_t + b
    assert jnp.allclose(out, ref_f32, atol=3e-2, rtol=3e-2)

    print("KERNEL_OK")
</pallas_src>

<mosaic_0001>
module attributes {stable_mosaic.version = 11 : i64} {
  func.func @_linear_kernel(%arg0: i32, %arg1: i32, %arg2: memref<16x768xf32, #tpu.memory_space<vmem>>, %arg3: memref<768x512xbf16, #tpu.memory_space<vmem>>, %arg4: memref<8x512xf32, #tpu.memory_space<vmem>>, %arg5: memref<16x512xf32, #tpu.memory_space<vmem>>) attributes {dimension_semantics = [#tpu.dimension_semantics<parallel>, #tpu.dimension_semantics<parallel>], iteration_bounds = array<i64: 1, 1>, scalar_prefetch = 0 : i64, scratch_operands = 0 : i64, tpu.core_type = #tpu.core_type<tc>, window_params = [{transform_indices = @transform_0, window_bounds = array<i64: 16, 768>}, {transform_indices = @transform_1, window_bounds = array<i64: 768, 512>}, {transform_indices = @transform_2, window_bounds = array<i64: 8, 512>}, {transform_indices = @transform_3, window_bounds = array<i64: 16, 512>}]} {
    %c0 = arith.constant 0 : index
    %c0_0 = arith.constant 0 : index
    %0 = vector.load %arg2[%c0, %c0_0] : memref<16x768xf32, #tpu.memory_space<vmem>>, vector<16x768xf32>
    %1 = arith.truncf %0 : vector<16x768xf32> to vector<16x768xbf16>
    %c0_1 = arith.constant 0 : index
    %c0_2 = arith.constant 0 : index
    %2 = vector.load %arg3[%c0_1, %c0_2] : memref<768x512xbf16, #tpu.memory_space<vmem>>, vector<768x512xbf16>
    %cst = arith.constant dense<0.000000e+00> : vector<16x512xf32>
    %3 = tpu.matmul %1, %2, %cst {dimension_numbers = #tpu.dot_dimension_numbers<[1], [0], [0], [1], [0, 0, 1, 1], [], []>} : vector<16x768xbf16>, vector<768x512xbf16>, vector<16x512xf32> -> vector<16x512xf32>
    %c0_3 = arith.constant 0 : index
    %c0_4 = arith.constant 0 : index
    %4 = vector.load %arg4[%c0_3, %c0_4] : memref<8x512xf32, #tpu.memory_space<vmem>>, vector<8x512xf32>
    %5 = vector.extract_strided_slice %4 {offsets = [0, 0], sizes = [1, 512], strides = [1, 1]} : vector<8x512xf32> to vector<1x512xf32>
    %6 = vector.broadcast %5 : vector<1x512xf32> to vector<16x512xf32>
    %7 = arith.addf %3, %6 : vector<16x512xf32>
    %c0_5 = arith.constant 0 : index
    %c0_6 = arith.constant 0 : index
    %8 = vector.load %arg5[%c0_5, %c0_6] : memref<16x512xf32, #tpu.memory_space<vmem>>, vector<16x512xf32>
    tpu.vector_store %arg5[%c0_5, %c0_6], %7 {strides = array<i32>} : memref<16x512xf32, #tpu.memory_space<vmem>>, vector<16x512xf32>,
    return
  }
  func.func @transform_0(%arg0: i32, %arg1: i32) -> (i32, i32) {
    %c0_i32 = arith.constant 0 : i32
    %c0_i32_0 = arith.constant 0 : i32
    return %arg1, %c0_i32 : i32, i32
  }
  func.func @transform_1(%arg0: i32, %arg1: i32) -> (i32, i32) {
    %c0_i32 = arith.constant 0 : i32
    %c0_i32_0 = arith.constant 0 : i32
    return %c0_i32, %arg0 : i32, i32
  }
  func.func @transform_2(%arg0: i32, %arg1: i32) -> (i32, i32) {
    %c0_i32 = arith.constant 0 : i32
    %c0_i32_0 = arith.constant 0 : i32
    return %c0_i32, %arg0 : i32, i32
  }
  func.func @transform_3(%arg0: i32, %arg1: i32) -> (i32, i32) {
    %c0_i32 = arith.constant 0 : i32
    return %arg1, %arg0 : i32, i32
  }
}

</mosaic_0001>

<bundles_post_ra>
// kernel: projector_forward.1
= control target key start
LH: loop header
LB: loop body
LE: loop exit
PB: predicated region body
PF: predicated region fallthrough
CT: control target
= control target key end

     0   :  { %8 = vsyncpa [#allocation3], 0  ;;  %s2546_s15 = smov [#allocation2]   ;;  %s2547_s17 = smov 256   ;;  %s2680_s0 = inlined_call_operand.vmem [shape: f32[16,768], index: 0, kind: input, shape index: {}]   ;;  %s2681_s1 = inlined_call_operand.hbm [shape: bf16[768,512], index: 1, kind: input, shape index: {}]   ;;  %s2682_s2 = inlined_call_operand.vmem [shape: f32[8,512], index: 2, kind: input, shape index: {}]   ;;  %s2683_s3 = inlined_call_operand.vmem [shape: f32[16,512], index: 3, kind: output, shape index: {}]  }
   0x1   :  { %s15_s14 = sshll.u32 %s2681_s1, 4  ;;  %s17_s16 = sshll.u32 %s2546_s15, 4  ;;  %s16_s14 = int_to_ptr.hbm [resolvable:$true] %s15_s14  ;;  %s18_s16 = int_to_ptr.vmem [resolvable:$true] %s17_s16 }
   0x2   :  { %s2548_s18 = smov 16  }
   0x3   :  { %23 = dma.hbm_to_vmem [thread:$0]  %s16_s14, 24576, %s18_s16, [#allocation3], %s2547_s17, %s2547_s17, %s2548_s18  }
   0x4   :  { %2544 = dma.done.wait [#allocation3], 24576  }
   0x5   :  { %2545 = vsyncadd [#allocation3], 4294942720  ;;  %v1671_v0 = vld [vmem:[#allocation2 + $0xe0] sm:$0xf]  ;;  %v2355_v1 = vld [vmem:[#allocation2 + $0xec] sm:$0xf0] }
   0x6   :  { %v1799_v2 = vld [vmem:[#allocation2 + $0x1e0] sm:$0xf]  ;;  %v1672_v3 = vor.u32 %v2355_v1, %v1671_v0  ;;  %v2387_v4 = vld [vmem:[#allocation2 + $0x1ec] sm:$0xf0] }
   0x7   :  { %v1927_v5 = vld [vmem:[#allocation2 + $0x2e0] sm:$0xf]  ;;  %v2419_v6 = vld [vmem:[#allocation2 + $0x2ec] sm:$0xf0]  ;;  %v1800_v7 = vor.u32 %v2387_v4, %v1799_v2 }
   0x8   :  { %v1928_v8 = vor.u32 %v2419_v6, %v1927_v5  ;;  %v2055_v9 = vld [vmem:[#allocation2 + $0x3e0] sm:$0xf]  ;;  %v2451_v10 = vld [vmem:[#allocation2 + $0x3ec] sm:$0xf0]  ;;  %1208 = vmatpush.bf16.msra.mxu0 %v1672_v3 }
   0x9   :  { %v1655_v11 = vld [vmem:[#allocation2 + $0xc0] sm:$0xf]  ;;  %v2056_v12 = vor.u32 %v2451_v10, %v2055_v9  ;;  %v2351_v13 = vld [vmem:[#allocation2 + $0xcc] sm:$0xf0]  ;;  %1222 = vmatpush.bf16.msra.mxu1 %v1800_v7 }
   0xa   :  { %v1783_v14 = vld [vmem:[#allocation2 + $0x1c0] sm:$0xf]  ;;  %v2383_v15 = vld [vmem:[#allocation2 + $0x1cc] sm:$0xf0]  ;;  %1236 = vmatpush.bf16.msra.mxu2 %v1928_v8  ;;  %v1656_v16 = vor.u32 %v2351_v13, %v1655_v11 }
   0xb   :  { %v1784_v17 = vor.u32 %v2383_v15, %v1783_v14  ;;  %v1911_v18 = vld [vmem:[#allocation2 + $0x2c0] sm:$0xf]  ;;  %v2415_v19 = vld [vmem:[#allocation2 + $0x2cc] sm:$0xf0]  ;;  %1250 = vmatpush.bf16.msra.mxu3 %v2056_v12 }
   0xc   :  { %v2039_v20 = vld [vmem:[#allocation2 + $0x3c0] sm:$0xf]  ;;  %v1912_v21 = vor.u32 %v2415_v19, %v1911_v18  ;;  %v2447_v22 = vld [vmem:[#allocation2 + $0x3cc] sm:$0xf0]  ;;  %1209 = vmatpush.bf16.msra.mxu0 %v1656_v16 }
   0xd   :  { %v1639_v23 = vld [vmem:[#allocation2 + $0xa0] sm:$0xf]  ;;  %v2347_v24 = vld [vmem:[#allocation2 + $0xac] sm:$0xf0]  ;;  %v2040_v25 = vor.u32 %v2447_v22, %v2039_v20  ;;  %1223 = vmatpush.bf16.msra.mxu1 %v1784_v17 }
   0xe   :  { %v1767_v26 = vld [vmem:[#allocation2 + $0x1a0] sm:$0xf]  ;;  %v2379_v27 = vld [vmem:[#allocation2 + $0x1ac] sm:$0xf0]  ;;  %v1640_v29 = vor.u32 %v2347_v24, %v1639_v23  ;;  %1237 = vmatpush.bf16.msra.mxu2 %v1912_v21 }
   0xf   :  { %v1895_v28 = vld [vmem:[#allocation2 + $0x2a0] sm:$0xf]  ;;  %v2411_v30 = vld [vmem:[#allocation2 + $0x2ac] sm:$0xf0]  ;;  %v1768_v33 = vor.u32 %v2379_v27, %v1767_v26  ;;  %1251 = vmatpush.bf16.msra.mxu3 %v2040_v25 }
  0x10   :  { %v2023_v31 = vld [vmem:[#allocation2 + $0x3a0] sm:$0xf]  ;;  %v2443_v32 = vld [vmem:[#allocation2 + $0x3ac] sm:$0xf0]  ;;  %v1896_v34 = vor.u32 %v2411_v30, %v1895_v28  ;;  %1210 = vmatpush.bf16.msra.mxu0 %v1640_v29 }
  0x11   :  { %v1623_v35 = vld [vmem:[#allocation2 + $0x80] sm:$0xf]  ;;  %v2343_v36 = vld [vmem:[#allocation2 + $0x8c] sm:$0xf0]  ;;  %v2024_v38 = vor.u32 %v2443_v32, %v2023_v31  ;;  %1224 = vmatpush.bf16.msra.mxu1 %v1768_v33  ;;  %v2353_v33 = vld [vmem:[#allocation2 + $0xe4] sm:$0xf] }
  0x12   :  { %v1751_v37 = vld [vmem:[#allocation2 + $0x180] sm:$0xf]  ;;  %v2375_v39 = vld [vmem:[#allocation2 + $0x18c] sm:$0xf0]  ;;  %v1624_v44 = vor.u32 %v2343_v36, %v1623_v35  ;;  %1238 = vmatpush.bf16.msra.mxu2 %v1896_v34  ;;  %v1673_v34 = vld [vmem:[#allocation2 + $0xf0] sm:$0xf0] }
  0x13   :  { %v1879_v40 = vld [vmem:[#allocation2 + $0x280] sm:$0xf]  ;;  %v2407_v41 = vld [vmem:[#allocation2 + $0x28c] sm:$0xf0]  ;;  %v1752_v45 = vor.u32 %v2375_v39, %v1751_v37  ;;  %1252 = vmatpush.bf16.msra.mxu3 %v2024_v38  ;;  %v2385_v37 = vld [vmem:[#allocation2 + $0x1e4] sm:$0xf] }
  0x14   :  { %v2007_v42 = vld [vmem:[#allocation2 + $0x380] sm:$0xf]  ;;  %v2439_v43 = vld [vmem:[#allocation2 + $0x38c] sm:$0xf0]  ;;  %v1880_v46 = vor.u32 %v2407_v41, %v1879_v40  ;;  %1211 = vmatpush.bf16.msra.mxu0 %v1624_v44  ;;  %v1801_v38 = vld [vmem:[#allocation2 + $0x1f0] sm:$0xf0] }
  0x15   :  { %v1607_v47 = vld [vmem:[#allocation2 + $0x60] sm:$0xf]  ;;  %v2339_v48 = vld [vmem:[#allocation2 + $0x6c] sm:$0xf0]  ;;  %v2008_v50 = vor.u32 %v2439_v43, %v2007_v42  ;;  %1225 = vmatpush.bf16.msra.mxu1 %v1752_v45  ;;  %v1676_v43 = vor.u32 %v2353_v33, %v1673_v34  ;;  %v1609_v33 = vld [vmem:[#allocation2 + $0x70] sm:$0xf0] }
  0x16   :  { %v1735_v49 = vld [vmem:[#allocation2 + $0x160] sm:$0xf]  ;;  %v2371_v51 = vld [vmem:[#allocation2 + $0x16c] sm:$0xf0]  ;;  %v1608_v56 = vor.u32 %v2339_v48, %v1607_v47  ;;  %1239 = vmatpush.bf16.msra.mxu2 %v1880_v46  ;;  %v1804_v47 = vor.u32 %v2385_v37, %v1801_v38  ;;  %v2349_v48 = vld [vmem:[#allocation2 + $0xc4] sm:$0xf] }
  0x17   :  { %v1863_v52 = vld [vmem:[#allocation2 + $0x260] sm:$0xf]  ;;  %v2403_v53 = vld [vmem:[#allocation2 + $0x26c] sm:$0xf0]  ;;  %v1736_v57 = vor.u32 %v2371_v51, %v1735_v49  ;;  %1253 = vmatpush.bf16.msra.mxu3 %v2008_v50  ;;  %v1657_v49 = vld [vmem:[#allocation2 + $0xd0] sm:$0xf0] }
  0x18   :  { %v1991_v54 = vld [vmem:[#allocation2 + $0x360] sm:$0xf]  ;;  %v2435_v55 = vld [vmem:[#allocation2 + $0x36c] sm:$0xf0]  ;;  %v1864_v58 = vor.u32 %v2403_v53, %v1863_v52  ;;  %1212 = vmatpush.bf16.msra.mxu0 %v1608_v56  ;;  %v2381_v50 = vld [vmem:[#allocation2 + $0x1c4] sm:$0xf] }
  0x19   :  { %v1591_v59 = vld [vmem:[#allocation2 + $0x40] sm:$0xf]  ;;  %v2335_v60 = vld [vmem:[#allocation2 + $0x4c] sm:$0xf0]  ;;  %v1992_v62 = vor.u32 %v2435_v55, %v1991_v54  ;;  %1226 = vmatpush.bf16.msra.mxu1 %v1736_v57  ;;  %v1785_v51 = vld [vmem:[#allocation2 + $0x1d0] sm:$0xf0] }
  0x1a   :  { %v1719_v61 = vld [vmem:[#allocation2 + $0x140] sm:$0xf]  ;;  %v2367_v63 = vld [vmem:[#allocation2 + $0x14c] sm:$0xf0]  ;;  %v1592_v4 = vor.u32 %v2335_v60, %v1591_v59  ;;  %1240 = vmatpush.bf16.msra.mxu2 %v1864_v58  ;;  %v1660_v59 = vor.u32 %v2349_v48, %v1657_v49  ;;  %v2369_v34 = vld [vmem:[#allocation2 + $0x164] sm:$0xf] }
  0x1b   :  { %v1847_v0 = vld [vmem:[#allocation2 + $0x240] sm:$0xf]  ;;  %v2399_v1 = vld [vmem:[#allocation2 + $0x24c] sm:$0xf0]  ;;  %v1720_v5 = vor.u32 %v2367_v63, %v1719_v61  ;;  %1254 = vmatpush.bf16.msra.mxu3 %v1992_v62  ;;  %v2345_v62 = vld [vmem:[#allocation2 + $0xa4] sm:$0xf]  ;;  %v1788_v63 = vor.u32 %v2381_v50, %v1785_v51 }
  0x1c   :  { %v1975_v2 = vld [vmem:[#allocation2 + $0x340] sm:$0xf]  ;;  %v2431_v3 = vld [vmem:[#allocation2 + $0x34c] sm:$0xf0]  ;;  %v1848_v6 = vor.u32 %v2399_v1, %v1847_v0  ;;  %1213 = vmatpush.bf16.msra.mxu0 %v1592_v4  ;;  %v1641_v0 = vld [vmem:[#allocation2 + $0xb0] sm:$0xf0] }
  0x1d   :  { %v1575_v7 = vld [vmem:[#allocation2 + $0x20] sm:$0xf]  ;;  %v2331_v8 = vld [vmem:[#allocation2 + $0x2c] sm:$0xf0]  ;;  %v1976_v10 = vor.u32 %v2431_v3, %v1975_v2  ;;  %1227 = vmatpush.bf16.msra.mxu1 %v1720_v5  ;;  %v31_v1 = vld [vmem:[%s2680_s0 + $0x8] sm:$0xff] }
  0x1e   :  { %v1703_v9 = vld [vmem:[#allocation2 + $0x120] sm:$0xf]  ;;  %v2363_v11 = vld [vmem:[#allocation2 + $0x12c] sm:$0xf0]  ;;  %v1576_v16 = vor.u32 %v2331_v8, %v1575_v7  ;;  %1241 = vmatpush.bf16.msra.mxu2 %v1848_v6  ;;  %v37_v2 = vld [vmem:[%s2680_s0 + $0x38] sm:$0xff] }
  0x1f   :  { %v1831_v12 = vld [vmem:[#allocation2 + $0x220] sm:$0xf]  ;;  %v2395_v13 = vld [vmem:[#allocation2 + $0x22c] sm:$0xf0]  ;;  %v1704_v19 = vor.u32 %v2363_v11, %v1703_v9  ;;  %1255 = vmatpush.bf16.msra.mxu3 %v1976_v10  ;;  %v2377_v3 = vld [vmem:[#allocation2 + $0x1a4] sm:$0xf]  ;;  %v2587_v6 = vpack.c.bf16 %v37_v2, %v31_v1 }
  0x20   :  { %v1959_v14 = vld [vmem:[#allocation2 + $0x320] sm:$0xf]  ;;  %v2427_v15 = vld [vmem:[#allocation2 + $0x32c] sm:$0xf0]  ;;  %v1832_v20 = vor.u32 %v2395_v13, %v1831_v12  ;;  %1214 = vmatpush.bf16.msra.mxu0 %v1576_v16  ;;  %v1769_v4 = vld [vmem:[#allocation2 + $0x1b0] sm:$0xf0]  ;;  %v1644_v12 = vor.u32 %v2345_v62, %v1641_v0 }
  0x21   :  { %v1559_v17 = vld [vmem:[#allocation2] sm:$0xf]  ;;  %v2327_v18 = vld [vmem:[#allocation2 + $0xc] sm:$0xf0]  ;;  %v1960_v24 = vor.u32 %v2427_v15, %v1959_v14  ;;  %1228 = vmatpush.bf16.msra.mxu1 %v1704_v19  ;;  %v2341_v13 = vld [vmem:[#allocation2 + $0x84] sm:$0xf]  ;;  %v1772_v16 = vor.u32 %v2377_v3, %v1769_v4 }
  0x22   :  { %v1687_v21 = vld [vmem:[#allocation2 + $0x100] sm:$0xf]  ;;  %v2359_v22 = vld [vmem:[#allocation2 + $0x10c] sm:$0xf0]  ;;  %v1560_v31 = vor.u32 %v2327_v18, %v1559_v17  ;;  %1242 = vmatpush.bf16.msra.mxu2 %v1832_v20  ;;  %v1625_v14 = vld [vmem:[#allocation2 + $0x90] sm:$0xf0] }
  0x23   :  { %v1815_v23 = vld [vmem:[#allocation2 + $0x200] sm:$0xf]  ;;  %v2391_v25 = vld [vmem:[#allocation2 + $0x20c] sm:$0xf0]  ;;  %v1688_v35 = vor.u32 %v2359_v22, %v1687_v21  ;;  %1256 = vmatpush.bf16.msra.mxu3 %v1960_v24  ;;  %v33_v18 = vld [vmem:[%s2680_s0 + $0x18] sm:$0xff] }
  0x24   :  { %v1943_v26 = vld [vmem:[#allocation2 + $0x300] sm:$0xf]  ;;  %v2423_v27 = vld [vmem:[#allocation2 + $0x30c] sm:$0xf0]  ;;  %v1816_v36 = vor.u32 %v2391_v25, %v1815_v23  ;;  %1215 = vmatpush.bf16.msra.mxu0 %v1560_v31  ;;  %v39_v19 = vld [vmem:[%s2680_s0 + $0x48] sm:$0xff] }
  0x25   :  { %v2183_v28 = vld [vmem:[#allocation2 + $0x4e0] sm:$0xf]  ;;  %v2483_v29 = vld [vmem:[#allocation2 + $0x4ec] sm:$0xf0]  ;;  %v1944_v39 = vor.u32 %v2423_v27, %v1943_v26  ;;  %1229 = vmatpush.bf16.msra.mxu1 %v1688_v35  ;;  %v2373_v20 = vld [vmem:[#allocation2 + $0x184] sm:$0xf]  ;;  %v2604_v23 = vpack.c.bf16 %v39_v19, %v33_v18  ;;  %v1628_v26 = vor.u32 %v2341_v13, %v1625_v14 }
  0x26   :  { %v2311_v30 = vld [vmem:[#allocation2 + $0x5e0] sm:$0xf]  ;;  %v2515_v32 = vld [vmem:[#allocation2 + $0x5ec] sm:$0xf0]  ;;  %v2184_v40 = vor.u32 %v2483_v29, %v2183_v28  ;;  %1243 = vmatpush.bf16.msra.mxu2 %v1816_v36  ;;  %v1753_v21 = vld [vmem:[#allocation2 + $0x190] sm:$0xf0] }
  0x27   :  { %v2167_v41 = vld [vmem:[#allocation2 + $0x4c0] sm:$0xf]  ;;  %v2312_v42 = vor.u32 %v2515_v32, %v2311_v30  ;;  %v2479_v44 = vld [vmem:[#allocation2 + $0x4cc] sm:$0xf0]  ;;  %1257 = vmatpush.bf16.msra.mxu3 %v1944_v39  ;;  %v1756_v30 = vor.u32 %v2373_v20, %v1753_v21  ;;  %v2337_v32 = vld [vmem:[#allocation2 + $0x64] sm:$0xf] }
  0x28   :  { %v2295_v45 = vld [vmem:[#allocation2 + $0x5c0] sm:$0xf]  ;;  %v2511_v46 = vld [vmem:[#allocation2 + $0x5cc] sm:$0xf0]  ;;  %1264 = vmatpush.bf16.msrb.mxu0 %v2184_v40  ;;  %v2168_v54 = vor.u32 %v2479_v44, %v2167_v41  ;;  %1230 = vmatmul.bf16.vlgmr.msra.gmra.mxu1 %v2587_v6  ;;  %v1737_v35 = vld [vmem:[#allocation2 + $0x170] sm:$0xf0]  ;;  %v1612_v38 = vor.u32 %v2337_v32, %v1609_v33 }
  0x29   :  { %v30_v52 = vld [vmem:[%s2680_s0] sm:$0xff]  ;;  %v36_v53 = vld [vmem:[%s2680_s0 + $0x30] sm:$0xff]  ;;  %1278 = vmatpush.bf16.msrb.mxu1 %v2312_v42  ;;  %v2296_v58 = vor.u32 %v2511_v46, %v2295_v45  ;;  %v1740_v42 = vor.u32 %v2369_v34, %v1737_v35 }
  0x2a   :  { %v2151_v55 = vld [vmem:[#allocation2 + $0x4a0] sm:$0xf]  ;;  %v2475_v56 = vld [vmem:[#allocation2 + $0x4ac] sm:$0xf0]  ;;  %v2578_v57 = vpack.c.bf16 %v36_v53, %v30_v52  ;;  %1292 = vmatpush.bf16.msrb.mxu2 %v1676_v43  ;;  %1258 = vmatmul.bf16.vlgmr.msra.gmra.mxu3 %v2604_v23  ;;  %v2333_v44 = vld [vmem:[#allocation2 + $0x44] sm:$0xf] }
  0x2b   :  { %v2279_v60 = vld [vmem:[#allocation2 + $0x5a0] sm:$0xf]  ;;  %v2507_v61 = vld [vmem:[#allocation2 + $0x5ac] sm:$0xf0]  ;;  %1306 = vmatpush.bf16.msrb.mxu3 %v1804_v47  ;;  %v2152_v7 = vor.u32 %v2475_v56, %v2151_v55  ;;  %v1593_v45 = vld [vmem:[#allocation2 + $0x50] sm:$0xf0] }
  0x2c   :  { %1216 = vmatmul.bf16.vlgmr.msra.gmra.mxu0 %v2578_v57  ;;  %v2135_v5 = vld [vmem:[#allocation2 + $0x480] sm:$0xf]  ;;  %v2471_v8 = vld [vmem:[#allocation2 + $0x48c] sm:$0xf0]  ;;  %v2280_v11 = vor.u32 %v2507_v61, %v2279_v60  ;;  %v2365_v46 = vld [vmem:[#allocation2 + $0x144] sm:$0xf]  ;;  %v1596_v50 = vor.u32 %v2333_v44, %v1593_v45 }
  0x2d   :  { %1265 = vmatpush.bf16.msrb.mxu0 %v2168_v54  ;;  %v2263_v9 = vld [vmem:[#allocation2 + $0x580] sm:$0xf]  ;;  %v2503_v10 = vld [vmem:[#allocation2 + $0x58c] sm:$0xf0]  ;;  %1279 = vmatpush.bf16.msrb.mxu1 %v2296_v58  ;;  %v2136_v24 = vor.u32 %v2471_v8, %v2135_v5  ;;  %v1721_v47 = vld [vmem:[#allocation2 + $0x150] sm:$0xf0] }
  0x2e   :  { %1293 = vmatpush.bf16.msrb.mxu2 %v1660_v59  ;;  %v32_v15 = vld [vmem:[%s2680_s0 + $0x10] sm:$0xff]  ;;  %v38_v17 = vld [vmem:[%s2680_s0 + $0x40] sm:$0xff]  ;;  %v2264_v25 = vor.u32 %v2503_v10, %v2263_v9  ;;  %v1724_v54 = vor.u32 %v2365_v46, %v1721_v47 }
  0x2f   :  { %1307 = vmatpush.bf16.msrb.mxu3 %v1788_v63  ;;  %v2602_v22 = vpack.c.bf16 %v38_v17, %v32_v15  ;;  %v2119_v27 = vld [vmem:[#allocation2 + $0x460] sm:$0xf]  ;;  %v2467_v28 = vld [vmem:[#allocation2 + $0x46c] sm:$0xf0]  ;;  %v2329_v56 = vld [vmem:[#allocation2 + $0x24] sm:$0xf] }
  0x30   :  { %v2247_v29 = vld [vmem:[#allocation2 + $0x560] sm:$0xf]  ;;  %v2499_v31 = vld [vmem:[#allocation2 + $0x56c] sm:$0xf0]  ;;  %v2120_v36 = vor.u32 %v2467_v28, %v2119_v27  ;;  %v1577_v58 = vld [vmem:[#allocation2 + $0x30] sm:$0xf0] }
  0x31   :  { %1266 = vmatpush.bf16.msrb.mxu0 %v2152_v7  ;;  %1280 = vmatpush.bf16.msrb.mxu1 %v2280_v11  ;;  %v2248_v37 = vor.u32 %v2499_v31, %v2247_v29  ;;  %v2103_v39 = vld [vmem:[#allocation2 + $0x440] sm:$0xf]  ;;  %v2463_v40 = vld [vmem:[#allocation2 + $0x44c] sm:$0xf0]  ;;  %v2361_v59 = vld [vmem:[#allocation2 + $0x124] sm:$0xf]  ;;  %v1580_v2 = vor.u32 %v2329_v56, %v1577_v58 }
  0x32   :  { %1294 = vmatpush.bf16.msrb.mxu2 %v1644_v12  ;;  %v2231_v41 = vld [vmem:[#allocation2 + $0x540] sm:$0xf]  ;;  %v2495_v43 = vld [vmem:[#allocation2 + $0x54c] sm:$0xf0]  ;;  %v2104_v48 = vor.u32 %v2463_v40, %v2103_v39  ;;  %v1705_v60 = vld [vmem:[#allocation2 + $0x130] sm:$0xf0] }
  0x33   :  { %1308 = vmatpush.bf16.msrb.mxu3 %v1772_v16  ;;  %1244 = vmatmul.bf16.vlgmr.msra.gmra.mxu2 %v2602_v22  ;;  %v2232_v49 = vor.u32 %v2495_v43, %v2231_v41  ;;  %v2087_v51 = vld [vmem:[#allocation2 + $0x420] sm:$0xf]  ;;  %v2459_v52 = vld [vmem:[#allocation2 + $0x42c] sm:$0xf0]  ;;  %v2325_v4 = vld [vmem:[#allocation2 + $0x4] sm:$0xf]  ;;  %v1708_v7 = vor.u32 %v2361_v59, %v1705_v60 }
  0x34   :  { %v2215_v53 = vld [vmem:[#allocation2 + $0x520] sm:$0xf]  ;;  %v2491_v55 = vld [vmem:[#allocation2 + $0x52c] sm:$0xf0]  ;;  %v2088_v61 = vor.u32 %v2459_v52, %v2087_v51  ;;  %v1561_v5 = vld [vmem:[#allocation2 + $0x10] sm:$0xf0] }
  0x35   :  { %1267 = vmatpush.bf16.msrb.mxu0 %v2136_v24  ;;  %1281 = vmatpush.bf16.msrb.mxu1 %v2264_v25  ;;  %v2071_v62 = vld [vmem:[#allocation2 + $0x400] sm:$0xf]  ;;  %v2455_v63 = vld [vmem:[#allocation2 + $0x40c] sm:$0xf0]  ;;  %v2216_v1 = vor.u32 %v2491_v55, %v2215_v53  ;;  %v2357_v8 = vld [vmem:[#allocation2 + $0x104] sm:$0xf]  ;;  %v1564_v19 = vor.u32 %v2325_v4, %v1561_v5 }
  0x36   :  { %1295 = vmatpush.bf16.msrb.mxu2 %v1628_v26  ;;  %v2199_v0 = vld [vmem:[#allocation2 + $0x500] sm:$0xf]  ;;  %v2487_v3 = vld [vmem:[#allocation2 + $0x50c] sm:$0xf0]  ;;  %v1689_v9 = vld [vmem:[#allocation2 + $0x110] sm:$0xf0]  ;;  %v2072_v14 = vor.u32 %v2455_v63, %v2071_v62 }
  0x37   :  { %1309 = vmatpush.bf16.msrb.mxu3 %v1756_v30  ;;  %v2417_v10 = vld [vmem:[#allocation2 + $0x2e4] sm:$0xf]  ;;  %v1929_v11 = vld [vmem:[#allocation2 + $0x2f0] sm:$0xf0]  ;;  %v2200_v18 = vor.u32 %v2487_v3, %v2199_v0  ;;  %v1692_v25 = vor.u32 %v2357_v8, %v1689_v9  ;;  %v35_v27 = vld [vmem:[%s2680_s0 + $0x28] sm:$0xff] }
  0x38   :  { %v2449_v12 = vld [vmem:[#allocation2 + $0x3e4] sm:$0xf]  ;;  %v2057_v13 = vld [vmem:[#allocation2 + $0x3f0] sm:$0xf0]  ;;  %v1932_v26 = vor.u32 %v2417_v10, %v1929_v11  ;;  %v41_v28 = vld [vmem:[%s2680_s0 + $0x58] sm:$0xff] }
  0x39   :  { %1268 = vmatpush.bf16.msrb.mxu0 %v2120_v36  ;;  %1282 = vmatpush.bf16.msrb.mxu1 %v2248_v37  ;;  %v2481_v15 = vld [vmem:[#allocation2 + $0x4e4] sm:$0xf]  ;;  %v2185_v16 = vld [vmem:[#allocation2 + $0x4f0] sm:$0xf0]  ;;  %v2060_v29 = vor.u32 %v2449_v12, %v2057_v13  ;;  %v2622_v39 = vpack.c.bf16 %v41_v28, %v35_v27 }
  0x3a   :  { %1296 = vmatpush.bf16.msrb.mxu2 %v1612_v38  ;;  %v2513_v17 = vld [vmem:[#allocation2 + $0x5e4] sm:$0xf]  ;;  %v2313_v20 = vld [vmem:[#allocation2 + $0x5f0] sm:$0xf0]  ;;  %v2188_v30 = vor.u32 %v2481_v15, %v2185_v16 }
  0x3b   :  { %1310 = vmatpush.bf16.msrb.mxu3 %v1740_v42  ;;  %v34_v21 = vld [vmem:[%s2680_s0 + $0x20] sm:$0xff]  ;;  %v40_v24 = vld [vmem:[%s2680_s0 + $0x50] sm:$0xff]  ;;  %v2316_v34 = vor.u32 %v2513_v17, %v2313_v20 }
  0x3c   :  { %v2413_v31 = vld [vmem:[#allocation2 + $0x2c4] sm:$0xf]  ;;  %v1913_v32 = vld [vmem:[#allocation2 + $0x2d0] sm:$0xf0]  ;;  %v2620_v35 = vpack.c.bf16 %v40_v24, %v34_v21 }
  0x3d   :  { %1269 = vmatpush.bf16.msrb.mxu0 %v2104_v48  ;;  %1283 = vmatpush.bf16.msrb.mxu1 %v2232_v49  ;;  %v2445_v33 = vld [vmem:[#allocation2 + $0x3c4] sm:$0xf]  ;;  %v2041_v36 = vld [vmem:[#allocation2 + $0x3d0] sm:$0xf0]  ;;  %v1916_v42 = vor.u32 %v2413_v31, %v1913_v32 }
  0x3e   :  { %1297 = vmatpush.bf16.msrb.mxu2 %v1596_v50  ;;  %v2477_v37 = vld [vmem:[#allocation2 + $0x4c4] sm:$0xf]  ;;  %v2169_v38 = vld [vmem:[#allocation2 + $0x4d0] sm:$0xf0]  ;;  %v2044_v43 = vor.u32 %v2445_v33, %v2041_v36 }
  0x3f   :  { %1311 = vmatpush.bf16.msrb.mxu3 %v1724_v54  ;;  %v2509_v40 = vld [vmem:[#allocation2 + $0x5c4] sm:$0xf]  ;;  %v2297_v41 = vld [vmem:[#allocation2 + $0x5d0] sm:$0xf0]  ;;  %v2172_v44 = vor.u32 %v2477_v37, %v2169_v38 }
  0x40   :  { %v2409_v45 = vld [vmem:[#allocation2 + $0x2a4] sm:$0xf]  ;;  %v1897_v46 = vld [vmem:[#allocation2 + $0x2b0] sm:$0xf0]  ;;  %v2300_v48 = vor.u32 %v2509_v40, %v2297_v41 }
  0x41   :  { %1270 = vmatpush.bf16.msrb.mxu0 %v2088_v61  ;;  %1284 = vmatpush.bf16.msrb.mxu1 %v2216_v1  ;;  %v2441_v47 = vld [vmem:[#allocation2 + $0x3a4] sm:$0xf]  ;;  %v2025_v49 = vld [vmem:[#allocation2 + $0x3b0] sm:$0xf0]  ;;  %v1900_v54 = vor.u32 %v2409_v45, %v1897_v46 }
  0x42   :  { %1298 = vmatpush.bf16.msrb.mxu2 %v1580_v2  ;;  %v2473_v50 = vld [vmem:[#allocation2 + $0x4a4] sm:$0xf]  ;;  %v2153_v51 = vld [vmem:[#allocation2 + $0x4b0] sm:$0xf0]  ;;  %v2028_v55 = vor.u32 %v2441_v47, %v2025_v49 }
  0x43   :  { %1312 = vmatpush.bf16.msrb.mxu3 %v1708_v7  ;;  %v2505_v52 = vld [vmem:[#allocation2 + $0x5a4] sm:$0xf]  ;;  %v2281_v53 = vld [vmem:[#allocation2 + $0x5b0] sm:$0xf0]  ;;  %v2156_v56 = vor.u32 %v2473_v50, %v2153_v51 }
  0x44   :  { %v2405_v58 = vld [vmem:[#allocation2 + $0x284] sm:$0xf]  ;;  %v1881_v59 = vld [vmem:[#allocation2 + $0x290] sm:$0xf0]  ;;  %v2284_v61 = vor.u32 %v2505_v52, %v2281_v53 }
  0x45   :  { %1271 = vmatpush.bf16.msrb.mxu0 %v2072_v14  ;;  %1285 = vmatpush.bf16.msrb.mxu1 %v2200_v18  ;;  %v2437_v60 = vld [vmem:[#allocation2 + $0x384] sm:$0xf]  ;;  %v2009_v62 = vld [vmem:[#allocation2 + $0x390] sm:$0xf0]  ;;  %v1884_v3 = vor.u32 %v2405_v58, %v1881_v59  ;;  %v2356_v58 = vld [vmem:[#allocation2 + $0xf4] sm:$0xf0] }
  0x46   :  { %1299 = vmatpush.bf16.msrb.mxu2 %v1564_v19  ;;  %v2469_v63 = vld [vmem:[#allocation2 + $0x484] sm:$0xf]  ;;  %v2137_v0 = vld [vmem:[#allocation2 + $0x490] sm:$0xf0]  ;;  %v2012_v4 = vor.u32 %v2437_v60, %v2009_v62  ;;  %v1807_v59 = vld [vmem:[#allocation2 + $0x1e8] sm:$0xf] }
  0x47   :  { %1313 = vmatpush.bf16.msrb.mxu3 %v1692_v25  ;;  %v2501_v1 = vld [vmem:[#allocation2 + $0x584] sm:$0xf]  ;;  %v2265_v2 = vld [vmem:[#allocation2 + $0x590] sm:$0xf0]  ;;  %v2140_v5 = vor.u32 %v2469_v63, %v2137_v0  ;;  %v1935_v62 = vld [vmem:[#allocation2 + $0x2e8] sm:$0xf] }
  0x48   :  { %1272 = vmatmul.bf16.vlgmr.msrb.gmra.mxu0 %v2620_v35  ;;  %1286 = vmatmul.bf16.vlgmr.msrb.gmra.mxu1 %v2622_v39  ;;  %v2401_v7 = vld [vmem:[#allocation2 + $0x264] sm:$0xf]  ;;  %v1865_v8 = vld [vmem:[#allocation2 + $0x270] sm:$0xf0]  ;;  %v2268_v10 = vor.u32 %v2501_v1, %v2265_v2  ;;  %v2420_v63 = vld [vmem:[#allocation2 + $0x2f4] sm:$0xf0] }
  0x49   :  { %1320 = vmatpush.bf16.msra.mxu0 %v1932_v26  ;;  %1334 = vmatpush.bf16.msra.mxu1 %v2060_v29  ;;  %v2433_v9 = vld [vmem:[#allocation2 + $0x364] sm:$0xf]  ;;  %v1993_v11 = vld [vmem:[#allocation2 + $0x370] sm:$0xf0]  ;;  %v1868_v16 = vor.u32 %v2401_v7, %v1865_v8  ;;  %v2063_v2 = vld [vmem:[#allocation2 + $0x3e8] sm:$0xf]  ;;  %v1936_v8 = vor.u32 %v2420_v63, %v1935_v62 }
  0x4a   :  { %1348 = vmatpush.bf16.msra.mxu2 %v2188_v30  ;;  %1314 = vmatmul.bf16.vlgmr.msrb.gmra.mxu3 %v2587_v6  ;;  %v2465_v12 = vld [vmem:[#allocation2 + $0x464] sm:$0xf]  ;;  %v2121_v13 = vld [vmem:[#allocation2 + $0x470] sm:$0xf0]  ;;  %v1996_v17 = vor.u32 %v2433_v9, %v1993_v11  ;;  %v1663_v9 = vld [vmem:[#allocation2 + $0xc8] sm:$0xf] }
  0x4b   :  { %1362 = vmatpush.bf16.msra.mxu3 %v2316_v34  ;;  %1300 = vmatmul.bf16.vlgmr.msrb.gmra.mxu2 %v2578_v57  ;;  %v2497_v14 = vld [vmem:[#allocation2 + $0x564] sm:$0xf]  ;;  %v2249_v15 = vld [vmem:[#allocation2 + $0x570] sm:$0xf0]  ;;  %v2124_v18 = vor.u32 %v2465_v12, %v2121_v13  ;;  %v1791_v11 = vld [vmem:[#allocation2 + $0x1c8] sm:$0xf] }
  0x4c   :  { %v2397_v19 = vld [vmem:[#allocation2 + $0x244] sm:$0xf]  ;;  %v1849_v20 = vld [vmem:[#allocation2 + $0x250] sm:$0xf0]  ;;  %v2252_v24 = vor.u32 %v2497_v14, %v2249_v15  ;;  %v2384_v13 = vld [vmem:[#allocation2 + $0x1d4] sm:$0xf0] }
  0x4d   :  { %1321 = vmatpush.bf16.msra.mxu0 %v1916_v42  ;;  %1335 = vmatpush.bf16.msra.mxu1 %v2044_v43  ;;  %v2429_v21 = vld [vmem:[#allocation2 + $0x344] sm:$0xf]  ;;  %v1977_v25 = vld [vmem:[#allocation2 + $0x350] sm:$0xf0]  ;;  %v1852_v30 = vor.u32 %v2397_v19, %v1849_v20  ;;  %v1919_v14 = vld [vmem:[#allocation2 + $0x2c8] sm:$0xf]  ;;  %v1792_v19 = vor.u32 %v2384_v13, %v1791_v11 }
  0x4e   :  { %1349 = vmatpush.bf16.msra.mxu2 %v2172_v44  ;;  %v2461_v26 = vld [vmem:[#allocation2 + $0x444] sm:$0xf]  ;;  %v2105_v27 = vld [vmem:[#allocation2 + $0x450] sm:$0xf0]  ;;  %v1980_v31 = vor.u32 %v2429_v21, %v1977_v25  ;;  %v2416_v15 = vld [vmem:[#allocation2 + $0x2d4] sm:$0xf0] }
  0x4f   :  { %1363 = vmatpush.bf16.msra.mxu3 %v2300_v48  ;;  %v2493_v28 = vld [vmem:[#allocation2 + $0x544] sm:$0xf]  ;;  %v2233_v29 = vld [vmem:[#allocation2 + $0x550] sm:$0xf0]  ;;  %v2108_v32 = vor.u32 %v2461_v26, %v2105_v27  ;;  %v1920_v20 = vor.u32 %v2416_v15, %v1919_v14  ;;  %v1647_v21 = vld [vmem:[#allocation2 + $0xa8] sm:$0xf] }
  0x50   :  { %v2393_v33 = vld [vmem:[#allocation2 + $0x224] sm:$0xf]  ;;  %v1833_v34 = vld [vmem:[#allocation2 + $0x230] sm:$0xf0]  ;;  %v2236_v37 = vor.u32 %v2493_v28, %v2233_v29  ;;  %v1775_v25 = vld [vmem:[#allocation2 + $0x1a8] sm:$0xf] }
  0x51   :  { %1322 = vmatpush.bf16.msra.mxu0 %v1900_v54  ;;  %1336 = vmatpush.bf16.msra.mxu1 %v2028_v55  ;;  %v2425_v36 = vld [vmem:[#allocation2 + $0x324] sm:$0xf]  ;;  %v1961_v38 = vld [vmem:[#allocation2 + $0x330] sm:$0xf0]  ;;  %v1836_v44 = vor.u32 %v2393_v33, %v1833_v34  ;;  %v2380_v27 = vld [vmem:[#allocation2 + $0x1b4] sm:$0xf0] }
  0x52   :  { %1350 = vmatpush.bf16.msra.mxu2 %v2156_v56  ;;  %v2457_v40 = vld [vmem:[#allocation2 + $0x424] sm:$0xf]  ;;  %v2089_v41 = vld [vmem:[#allocation2 + $0x430] sm:$0xf0]  ;;  %v1964_v47 = vor.u32 %v2425_v36, %v1961_v38  ;;  %v1679_v56 = vld [vmem:[#allocation2 + $0xe8] sm:$0xf]  ;;  %v1776_v33 = vor.u32 %v2380_v27, %v1775_v25 }
  0x53   :  { %1364 = vmatpush.bf16.msra.mxu3 %v2284_v61  ;;  %v2489_v42 = vld [vmem:[#allocation2 + $0x524] sm:$0xf]  ;;  %v2217_v43 = vld [vmem:[#allocation2 + $0x530] sm:$0xf0]  ;;  %v2092_v48 = vor.u32 %v2457_v40, %v2089_v41  ;;  %v2388_v61 = vld [vmem:[#allocation2 + $0x1f4] sm:$0xf0] }
  0x54   :  { %v2389_v45 = vld [vmem:[#allocation2 + $0x204] sm:$0xf]  ;;  %v1817_v46 = vld [vmem:[#allocation2 + $0x210] sm:$0xf0]  ;;  %v2220_v52 = vor.u32 %v2489_v42, %v2217_v43  ;;  %v1808_v7 = vor.u32 %v2388_v61, %v1807_v59  ;;  %v1903_v28 = vld [vmem:[#allocation2 + $0x2a8] sm:$0xf] }
  0x55   :  { %1323 = vmatpush.bf16.msra.mxu0 %v1884_v3  ;;  %1337 = vmatpush.bf16.msra.mxu1 %v2012_v4  ;;  %v2421_v49 = vld [vmem:[#allocation2 + $0x304] sm:$0xf]  ;;  %v1945_v50 = vld [vmem:[#allocation2 + $0x310] sm:$0xf0]  ;;  %v1820_v60 = vor.u32 %v2389_v45, %v1817_v46  ;;  %v2452_v3 = vld [vmem:[#allocation2 + $0x3f4] sm:$0xf0] }
  0x56   :  { %1351 = vmatpush.bf16.msra.mxu2 %v2140_v5  ;;  %v2453_v51 = vld [vmem:[#allocation2 + $0x404] sm:$0xf]  ;;  %v2073_v53 = vld [vmem:[#allocation2 + $0x410] sm:$0xf0]  ;;  %v1948_v0 = vor.u32 %v2421_v49, %v1945_v50  ;;  %v1680_v5 = vor.u32 %v2356_v58, %v1679_v56  ;;  %v2064_v12 = vor.u32 %v2452_v3, %v2063_v2  ;;  %v2412_v29 = vld [vmem:[#allocation2 + $0x2b4] sm:$0xf0] }
  0x57   :  { %1365 = vmatpush.bf16.msra.mxu3 %v2268_v10  ;;  %v2485_v54 = vld [vmem:[#allocation2 + $0x504] sm:$0xf]  ;;  %v2201_v55 = vld [vmem:[#allocation2 + $0x510] sm:$0xf0]  ;;  %v2076_v1 = vor.u32 %v2453_v51, %v2073_v53  ;;  %v2352_v10 = vld [vmem:[#allocation2 + $0xd4] sm:$0xf0]  ;;  %v1904_v34 = vor.u32 %v2412_v29, %v1903_v28 }
  0x58   :  { %v2204_v4 = vor.u32 %v2485_v54, %v2201_v55  ;;  %v1631_v36 = vld [vmem:[#allocation2 + $0x88] sm:$0xf]  ;;  %v2376_v41 = vld [vmem:[#allocation2 + $0x194] sm:$0xf0] }
  0x59   :  { %1324 = vmatpush.bf16.msra.mxu0 %v1868_v16  ;;  %1338 = vmatpush.bf16.msra.mxu1 %v1996_v17  ;;  %v2047_v16 = vld [vmem:[#allocation2 + $0x3c8] sm:$0xf]  ;;  %v2448_v17 = vld [vmem:[#allocation2 + $0x3d4] sm:$0xf0] }
  0x5a   :  { %1352 = vmatpush.bf16.msra.mxu2 %v2124_v18  ;;  %v1664_v18 = vor.u32 %v2352_v10, %v1663_v9  ;;  %v2048_v26 = vor.u32 %v2448_v17, %v2047_v16  ;;  %v1759_v38 = vld [vmem:[#allocation2 + $0x188] sm:$0xf]  ;;  %v2408_v43 = vld [vmem:[#allocation2 + $0x294] sm:$0xf0] }
  0x5b   :  { %1366 = vmatpush.bf16.msra.mxu3 %v2252_v24  ;;  %v2348_v24 = vld [vmem:[#allocation2 + $0xb4] sm:$0xf0]  ;;  %v1887_v42 = vld [vmem:[#allocation2 + $0x288] sm:$0xf] }
  0x5c   :  { %v2440_v45 = vld [vmem:[#allocation2 + $0x394] sm:$0xf0]  ;;  %v1615_v49 = vld [vmem:[#allocation2 + $0x68] sm:$0xf] }
  0x5d   :  { %1325 = vmatpush.bf16.msra.mxu0 %v1852_v30  ;;  %1339 = vmatpush.bf16.msra.mxu1 %v1980_v31  ;;  %v2031_v30 = vld [vmem:[#allocation2 + $0x3a8] sm:$0xf]  ;;  %v2444_v31 = vld [vmem:[#allocation2 + $0x3b4] sm:$0xf0] }
  0x5e   :  { %1353 = vmatpush.bf16.msra.mxu2 %v2108_v32  ;;  %v1648_v32 = vor.u32 %v2348_v24, %v1647_v21  ;;  %v2032_v40 = vor.u32 %v2444_v31, %v2031_v30  ;;  %v2340_v50 = vld [vmem:[#allocation2 + $0x74] sm:$0xf0]  ;;  %v1743_v51 = vld [vmem:[#allocation2 + $0x168] sm:$0xf] }
  0x5f   :  { %1367 = vmatpush.bf16.msra.mxu3 %v2236_v37  ;;  %v2344_v37 = vld [vmem:[#allocation2 + $0x94] sm:$0xf0]  ;;  %v1871_v54 = vld [vmem:[#allocation2 + $0x268] sm:$0xf]  ;;  %v1616_v59 = vor.u32 %v2340_v50, %v1615_v49 }
  0x60   :  { %v1632_v46 = vor.u32 %v2344_v37, %v1631_v36  ;;  %v2372_v53 = vld [vmem:[#allocation2 + $0x174] sm:$0xf0]  ;;  %v1999_v56 = vld [vmem:[#allocation2 + $0x368] sm:$0xf] }
  0x61   :  { %1326 = vmatpush.bf16.msra.mxu0 %v1836_v44  ;;  %1340 = vmatpush.bf16.msra.mxu1 %v1964_v47  ;;  %v2015_v44 = vld [vmem:[#allocation2 + $0x388] sm:$0xf]  ;;  %v1760_v47 = vor.u32 %v2376_v41, %v1759_v38  ;;  %v2404_v55 = vld [vmem:[#allocation2 + $0x274] sm:$0xf0]  ;;  %v2354_v41 = vld [vmem:[#allocation2 + $0xec] sm:$0xf] }
  0x62   :  { %1354 = vmatpush.bf16.msra.mxu2 %v2092_v48  ;;  %v1888_v48 = vor.u32 %v2408_v43, %v1887_v42  ;;  %v2436_v58 = vld [vmem:[#allocation2 + $0x374] sm:$0xf0]  ;;  %v1872_v61 = vor.u32 %v2404_v55, %v1871_v54  ;;  %v1599_v62 = vld [vmem:[#allocation2 + $0x48] sm:$0xf]  ;;  %v1681_v42 = vld [vmem:[#allocation2 + $0xf8] sm:$0xf0] }
  0x63   :  { %1368 = vmatpush.bf16.msra.mxu3 %v2220_v52  ;;  %v2016_v52 = vor.u32 %v2440_v45, %v2015_v44  ;;  %v2336_v63 = vld [vmem:[#allocation2 + $0x54] sm:$0xf0]  ;;  %v1855_v3 = vld [vmem:[#allocation2 + $0x248] sm:$0xf]  ;;  %v2386_v45 = vld [vmem:[#allocation2 + $0x1ec] sm:$0xf]  ;;  %v1684_v50 = vor.u32 %v2354_v41, %v1681_v42 }
  0x64   :  { %v2368_v2 = vld [vmem:[#allocation2 + $0x154] sm:$0xf0]  ;;  %v1583_v11 = vld [vmem:[#allocation2 + $0x28] sm:$0xf] }
  0x65   :  { %1327 = vmatpush.bf16.msra.mxu0 %v1820_v60  ;;  %1341 = vmatpush.bf16.msra.mxu1 %v1948_v0  ;;  %v1744_v60 = vor.u32 %v2372_v53, %v1743_v51  ;;  %v1727_v0 = vld [vmem:[#allocation2 + $0x148] sm:$0xf]  ;;  %v2364_v15 = vld [vmem:[#allocation2 + $0x134] sm:$0xf0] }
  0x66   :  { %1355 = vmatpush.bf16.msra.mxu2 %v2076_v1  ;;  %v2000_v1 = vor.u32 %v2436_v58, %v1999_v56  ;;  %v1728_v9 = vor.u32 %v2368_v2, %v1727_v0  ;;  %v1711_v13 = vld [vmem:[#allocation2 + $0x128] sm:$0xf]  ;;  %v2396_v17 = vld [vmem:[#allocation2 + $0x234] sm:$0xf0]  ;;  %v2350_v56 = vld [vmem:[#allocation2 + $0xcc] sm:$0xf] }
  0x67   :  { %1369 = vmatpush.bf16.msra.mxu3 %v2204_v4  ;;  %v2400_v4 = vld [vmem:[#allocation2 + $0x254] sm:$0xf0]  ;;  %v1839_v16 = vld [vmem:[#allocation2 + $0x228] sm:$0xf]  ;;  %v1712_v25 = vor.u32 %v2364_v15, %v1711_v13  ;;  %v1665_v58 = vld [vmem:[#allocation2 + $0xd8] sm:$0xf0] }
  0x68   :  { %1328 = vmatmul.bf16.vlgmr.msra.gmra.mxu0 %v2602_v22  ;;  %1342 = vmatmul.bf16.vlgmr.msra.gmra.mxu1 %v2604_v23  ;;  %v1856_v10 = vor.u32 %v2400_v4, %v1855_v3  ;;  %v1567_v21 = vld [vmem:[#allocation2 + $0x8] sm:$0xf]  ;;  %v2328_v24 = vld [vmem:[#allocation2 + $0x14] sm:$0xf0] }
  0x69   :  { %1376 = vmatpush.bf16.msrb.mxu0 %v1680_v5  ;;  %1390 = vmatpush.bf16.msrb.mxu1 %v1808_v7  ;;  %v1983_v5 = vld [vmem:[#allocation2 + $0x348] sm:$0xf]  ;;  %v2432_v7 = vld [vmem:[#allocation2 + $0x354] sm:$0xf0]  ;;  %v1568_v38 = vor.u32 %v2328_v24, %v1567_v21  ;;  %v1761_v21 = vld [vmem:[#allocation2 + $0x198] sm:$0xf0] }
  0x6a   :  { %1404 = vmatpush.bf16.msrb.mxu2 %v1936_v8  ;;  %1370 = vmatmul.bf16.vlgmr.msra.gmra.mxu3 %v2622_v39  ;;  %v1600_v8 = vor.u32 %v2336_v63, %v1599_v62  ;;  %v1984_v14 = vor.u32 %v2432_v7, %v1983_v5  ;;  %v1695_v27 = vld [vmem:[#allocation2 + $0x108] sm:$0xf]  ;;  %v2360_v28 = vld [vmem:[#allocation2 + $0x114] sm:$0xf0]  ;;  %v1668_v63 = vor.u32 %v2350_v56, %v1665_v58  ;;  %v2346_v5 = vld [vmem:[#allocation2 + $0xac] sm:$0xf] }
  0x6b   :  { %1418 = vmatpush.bf16.msrb.mxu3 %v2064_v12  ;;  %1356 = vmatmul.bf16.vlgmr.msra.gmra.mxu2 %v2620_v35  ;;  %v2332_v12 = vld [vmem:[#allocation2 + $0x34] sm:$0xf0]  ;;  %v1823_v29 = vld [vmem:[#allocation2 + $0x208] sm:$0xf]  ;;  %v1696_v43 = vor.u32 %v2360_v28, %v1695_v27  ;;  %v1649_v7 = vld [vmem:[#allocation2 + $0xb8] sm:$0xf0] }
  0x6c   :  { %v2392_v31 = vld [vmem:[#allocation2 + $0x214] sm:$0xf0]  ;;  %v2319_v37 = vld [vmem:[#allocation2 + $0x5e8] sm:$0xf] }
  0x6d   :  { %1377 = vmatpush.bf16.msrb.mxu0 %v1664_v18  ;;  %1391 = vmatpush.bf16.msrb.mxu1 %v1792_v19  ;;  %v1967_v18 = vld [vmem:[#allocation2 + $0x328] sm:$0xf]  ;;  %v2428_v19 = vld [vmem:[#allocation2 + $0x334] sm:$0xf0]  ;;  %v1824_v44 = vor.u32 %v2392_v31, %v1823_v29 }
  0x6e   :  { %1405 = vmatpush.bf16.msrb.mxu2 %v1920_v20  ;;  %v1584_v20 = vor.u32 %v2332_v12, %v1583_v11  ;;  %v1968_v30 = vor.u32 %v2428_v19, %v1967_v18  ;;  %v2484_v36 = vld [vmem:[#allocation2 + $0x4f4] sm:$0xf0]  ;;  %v2175_v51 = vld [vmem:[#allocation2 + $0x4c8] sm:$0xf]  ;;  %v1652_v12 = vor.u32 %v2346_v5, %v1649_v7  ;;  %v2342_v18 = vld [vmem:[#allocation2 + $0x8c] sm:$0xf] }
  0x6f   :  { %1419 = vmatpush.bf16.msrb.mxu3 %v2048_v26  ;;  %v1840_v26 = vor.u32 %v2396_v17, %v1839_v16  ;;  %v2303_v53 = vld [vmem:[#allocation2 + $0x5c8] sm:$0xf]  ;;  %v2512_v55 = vld [vmem:[#allocation2 + $0x5d4] sm:$0xf0]  ;;  %v1633_v19 = vld [vmem:[#allocation2 + $0x98] sm:$0xf0] }
  0x70   :  { %v2304_v62 = vor.u32 %v2512_v55, %v2303_v53  ;;  %v2159_v0 = vld [vmem:[#allocation2 + $0x4a8] sm:$0xf]  ;;  %v2508_v4 = vld [vmem:[#allocation2 + $0x5b4] sm:$0xf0]  ;;  %v2326_v7 = vld [vmem:[#allocation2 + $0xc] sm:$0xf] }
  0x71   :  { %1378 = vmatpush.bf16.msrb.mxu0 %v1648_v32  ;;  %1392 = vmatpush.bf16.msrb.mxu1 %v1776_v33  ;;  %v1951_v32 = vld [vmem:[#allocation2 + $0x308] sm:$0xf]  ;;  %v2424_v33 = vld [vmem:[#allocation2 + $0x314] sm:$0xf0] }
  0x72   :  { %1406 = vmatpush.bf16.msrb.mxu2 %v1904_v34  ;;  %v2191_v34 = vld [vmem:[#allocation2 + $0x4e8] sm:$0xf]  ;;  %v2504_v17 = vld [vmem:[#allocation2 + $0x594] sm:$0xf0] }
  0x73   :  { %1420 = vmatpush.bf16.msrb.mxu3 %v2032_v40  ;;  %v2516_v40 = vld [vmem:[#allocation2 + $0x5f4] sm:$0xf0]  ;;  %v2287_v2 = vld [vmem:[#allocation2 + $0x5a8] sm:$0xf] }
  0x74   :  { %v2320_v49 = vor.u32 %v2516_v40, %v2319_v37  ;;  %v2288_v11 = vor.u32 %v2508_v4, %v2287_v2  ;;  %v2143_v13 = vld [vmem:[#allocation2 + $0x488] sm:$0xf]  ;;  %v2468_v28 = vld [vmem:[#allocation2 + $0x474] sm:$0xf0] }
  0x75   :  { %1379 = vmatpush.bf16.msrb.mxu0 %v1632_v46  ;;  %1393 = vmatpush.bf16.msrb.mxu1 %v1760_v47  ;;  %v1809_v46 = vld [vmem:[#allocation2 + $0x1f8] sm:$0xf0]  ;;  %v1952_v47 = vor.u32 %v2424_v33, %v1951_v32  ;;  %v2271_v15 = vld [vmem:[#allocation2 + $0x588] sm:$0xf]  ;;  %v2500_v31 = vld [vmem:[#allocation2 + $0x574] sm:$0xf0] }
  0x76   :  { %1407 = vmatpush.bf16.msrb.mxu2 %v1888_v48  ;;  %v2192_v48 = vor.u32 %v2484_v36, %v2191_v34  ;;  %v1812_v54 = vor.u32 %v2386_v45, %v1809_v46  ;;  %v2127_v27 = vld [vmem:[#allocation2 + $0x468] sm:$0xf]  ;;  %v2338_v32 = vld [vmem:[#allocation2 + $0x6c] sm:$0xf]  ;;  %v1617_v33 = vld [vmem:[#allocation2 + $0x78] sm:$0xf0] }
  0x77   :  { %1421 = vmatpush.bf16.msrb.mxu3 %v2016_v52  ;;  %v2480_v52 = vld [vmem:[#allocation2 + $0x4d4] sm:$0xf0]  ;;  %v2255_v29 = vld [vmem:[#allocation2 + $0x568] sm:$0xf]  ;;  %v2370_v34 = vld [vmem:[#allocation2 + $0x16c] sm:$0xf]  ;;  %v2128_v37 = vor.u32 %v2468_v28, %v2127_v27  ;;  %v1620_v40 = vor.u32 %v2338_v32, %v1617_v33 }
  0x78   :  { %v1745_v36 = vld [vmem:[#allocation2 + $0x178] sm:$0xf0]  ;;  %v2111_v41 = vld [vmem:[#allocation2 + $0x448] sm:$0xf]  ;;  %v2464_v42 = vld [vmem:[#allocation2 + $0x454] sm:$0xf0] }
  0x79   :  { %1380 = vmatpush.bf16.msrb.mxu0 %v1616_v59  ;;  %1394 = vmatpush.bf16.msrb.mxu1 %v1744_v60  ;;  %v2382_v59 = vld [vmem:[#allocation2 + $0x1cc] sm:$0xf]  ;;  %v1793_v60 = vld [vmem:[#allocation2 + $0x1d8] sm:$0xf0]  ;;  %v2496_v45 = vld [vmem:[#allocation2 + $0x554] sm:$0xf0] }
  0x7a   :  { %1408 = vmatpush.bf16.msrb.mxu2 %v1872_v61  ;;  %v2176_v61 = vor.u32 %v2480_v52, %v2175_v51  ;;  %v1796_v3 = vor.u32 %v2382_v59, %v1793_v60  ;;  %v2334_v46 = vld [vmem:[#allocation2 + $0x4c] sm:$0xf]  ;;  %v2095_v53 = vld [vmem:[#allocation2 + $0x428] sm:$0xf]  ;;  %v2492_v58 = vld [vmem:[#allocation2 + $0x534] sm:$0xf0] }
  0x7b   :  { %1422 = vmatpush.bf16.msrb.mxu3 %v2000_v1  ;;  %v2476_v1 = vld [vmem:[#allocation2 + $0x4b4] sm:$0xf0]  ;;  %v2223_v55 = vld [vmem:[#allocation2 + $0x528] sm:$0xf]  ;;  %v2330_v59 = vld [vmem:[#allocation2 + $0x2c] sm:$0xf] }
  0x7c   :  { %v1585_v60 = vld [vmem:[#allocation2 + $0x38] sm:$0xf0]  ;;  %v2224_v2 = vor.u32 %v2492_v58, %v2223_v55  ;;  %v2207_v4 = vld [vmem:[#allocation2 + $0x508] sm:$0xf]  ;;  %v2488_v5 = vld [vmem:[#allocation2 + $0x514] sm:$0xf0] }
  0x7d   :  { %1381 = vmatpush.bf16.msrb.mxu0 %v1600_v8  ;;  %1395 = vmatpush.bf16.msrb.mxu1 %v1728_v9  ;;  %v2378_v8 = vld [vmem:[#allocation2 + $0x1ac] sm:$0xf]  ;;  %v1777_v9 = vld [vmem:[#allocation2 + $0x1b8] sm:$0xf0] }
  0x7e   :  { %1409 = vmatpush.bf16.msrb.mxu2 %v1856_v10  ;;  %v2160_v10 = vor.u32 %v2476_v1, %v2159_v0  ;;  %v1780_v16 = vor.u32 %v2378_v8, %v1777_v9  ;;  %v2079_v0 = vld [vmem:[#allocation2 + $0x408] sm:$0xf]  ;;  %v2456_v1 = vld [vmem:[#allocation2 + $0x414] sm:$0xf0]  ;;  %v1569_v9 = vld [vmem:[#allocation2 + $0x18] sm:$0xf0] }
  0x7f   :  { %1423 = vmatpush.bf16.msrb.mxu3 %v1984_v14  ;;  %v2472_v14 = vld [vmem:[#allocation2 + $0x494] sm:$0xf0]  ;;  %v2049_v33 = vld [vmem:[#allocation2 + $0x3d8] sm:$0xf0]  ;;  %v2406_v55 = vld [vmem:[#allocation2 + $0x28c] sm:$0xf] }
  0x80   :  { %v2144_v24 = vor.u32 %v2472_v14, %v2143_v13  ;;  %v1937_v13 = vld [vmem:[#allocation2 + $0x2f8] sm:$0xf0]  ;;  %v2450_v14 = vld [vmem:[#allocation2 + $0x3ec] sm:$0xf] }
  0x81   :  { %1382 = vmatpush.bf16.msrb.mxu0 %v1584_v20  ;;  %1396 = vmatpush.bf16.msrb.mxu1 %v1712_v25  ;;  %v2374_v20 = vld [vmem:[#allocation2 + $0x18c] sm:$0xf]  ;;  %v2272_v25 = vor.u32 %v2504_v17, %v2271_v15  ;;  %v2080_v15 = vor.u32 %v2456_v1, %v2079_v0 }
  0x82   :  { %1410 = vmatpush.bf16.msrb.mxu2 %v1840_v26  ;;  %v1636_v26 = vor.u32 %v2342_v18, %v1633_v19  ;;  %v2482_v17 = vld [vmem:[#allocation2 + $0x4ec] sm:$0xf]  ;;  %v2193_v18 = vld [vmem:[#allocation2 + $0x4f8] sm:$0xf0]  ;;  %v2208_v19 = vor.u32 %v2488_v5, %v2207_v4 }
  0x83   :  { %1424 = vmatpush.bf16.msrb.mxu3 %v1968_v30  ;;  %v1764_v30 = vor.u32 %v2374_v20, %v1761_v21  ;;  %v1572_v20 = vor.u32 %v2326_v7, %v1569_v9  ;;  %v2514_v21 = vld [vmem:[#allocation2 + $0x5ec] sm:$0xf]  ;;  %v2196_v28 = vor.u32 %v2482_v17, %v2193_v18  ;;  %v2001_v7 = vld [vmem:[#allocation2 + $0x378] sm:$0xf0] }
  0x84   :  { %v2438_v58 = vld [vmem:[#allocation2 + $0x38c] sm:$0xf]  ;;  %v2129_v9 = vld [vmem:[#allocation2 + $0x478] sm:$0xf0] }
  0x85   :  { %1383 = vmatpush.bf16.msrb.mxu0 %v1568_v38  ;;  %1397 = vmatpush.bf16.msrb.mxu1 %v1696_v43  ;;  %v2256_v38 = vor.u32 %v2500_v31, %v2255_v29  ;;  %v2239_v43 = vld [vmem:[#allocation2 + $0x548] sm:$0xf]  ;;  %v2414_v29 = vld [vmem:[#allocation2 + $0x2cc] sm:$0xf]  ;;  %v1985_v18 = vld [vmem:[#allocation2 + $0x358] sm:$0xf0] }
  0x86   :  { %1411 = vmatpush.bf16.msrb.mxu2 %v1824_v44  ;;  %v1748_v44 = vor.u32 %v2370_v34, %v1745_v36  ;;  %v2240_v51 = vor.u32 %v2496_v45, %v2239_v43  ;;  %v2446_v31 = vld [vmem:[#allocation2 + $0x3cc] sm:$0xf]  ;;  %v2177_v36 = vld [vmem:[#allocation2 + $0x4d8] sm:$0xf0] }
  0x87   :  { %1425 = vmatpush.bf16.msrb.mxu3 %v1952_v47  ;;  %v1601_v47 = vld [vmem:[#allocation2 + $0x58] sm:$0xf0]  ;;  %v2478_v34 = vld [vmem:[#allocation2 + $0x4cc] sm:$0xf] }
  0x88   :  { %1384 = vmatmul.bf16.vlgmr.msrb.gmra.mxu0 %v2578_v57  ;;  %1398 = vmatmul.bf16.vlgmr.msrb.gmra.mxu1 %v2587_v6  ;;  %v1604_v52 = vor.u32 %v2334_v46, %v1601_v47  ;;  %v2410_v43 = vld [vmem:[#allocation2 + $0x2ac] sm:$0xf]  ;;  %v2033_v47 = vld [vmem:[#allocation2 + $0x3b8] sm:$0xf0] }
  0x89   :  { %1432 = vmatpush.bf16.msra.mxu0 %v2192_v48  ;;  %1446 = vmatpush.bf16.msra.mxu1 %v2320_v49  ;;  %v2366_v48 = vld [vmem:[#allocation2 + $0x14c] sm:$0xf]  ;;  %v1729_v49 = vld [vmem:[#allocation2 + $0x158] sm:$0xf0] }
  0x8a   :  { %1460 = vmatpush.bf16.msra.mxu2 %v1684_v50  ;;  %1426 = vmatmul.bf16.vlgmr.msrb.gmra.mxu3 %v2604_v23  ;;  %v2112_v50 = vor.u32 %v2464_v42, %v2111_v41  ;;  %v1732_v56 = vor.u32 %v2366_v48, %v1729_v49  ;;  %v2052_v41 = vor.u32 %v2446_v31, %v2049_v33  ;;  %v2442_v45 = vld [vmem:[#allocation2 + $0x3ac] sm:$0xf]  ;;  %v2161_v49 = vld [vmem:[#allocation2 + $0x4b8] sm:$0xf0] }
  0x8b   :  { %1474 = vmatpush.bf16.msra.mxu3 %v1812_v54  ;;  %1412 = vmatmul.bf16.vlgmr.msrb.gmra.mxu2 %v2602_v22  ;;  %v2460_v54 = vld [vmem:[#allocation2 + $0x434] sm:$0xf0]  ;;  %v2180_v42 = vor.u32 %v2478_v34, %v2177_v36  ;;  %v2474_v48 = vld [vmem:[#allocation2 + $0x4ac] sm:$0xf]  ;;  %v1841_v33 = vld [vmem:[#allocation2 + $0x238] sm:$0xf0] }
  0x8c   :  { %v2434_v4 = vld [vmem:[#allocation2 + $0x36c] sm:$0xf] }
  0x8d   :  { %1433 = vmatpush.bf16.msra.mxu0 %v2176_v61  ;;  %1447 = vmatpush.bf16.msra.mxu1 %v2304_v62  ;;  %v2362_v61 = vld [vmem:[#allocation2 + $0x12c] sm:$0xf]  ;;  %v1713_v62 = vld [vmem:[#allocation2 + $0x138] sm:$0xf0] }
  0x8e   :  { %1461 = vmatpush.bf16.msra.mxu2 %v1668_v63  ;;  %v2096_v63 = vor.u32 %v2460_v54, %v2095_v53  ;;  %v1716_v8 = vor.u32 %v2362_v61, %v1713_v62  ;;  %v2036_v53 = vor.u32 %v2442_v45, %v2033_v47  ;;  %v2164_v54 = vor.u32 %v2474_v48, %v2161_v49  ;;  %v2470_v61 = vld [vmem:[#allocation2 + $0x48c] sm:$0xf]  ;;  %v2145_v62 = vld [vmem:[#allocation2 + $0x498] sm:$0xf0] }
  0x8f   :  { %1475 = vmatpush.bf16.msra.mxu3 %v1796_v3  ;;  %v1588_v3 = vor.u32 %v2330_v59, %v1585_v60  ;;  %v2017_v60 = vld [vmem:[#allocation2 + $0x398] sm:$0xf0]  ;;  %v2430_v17 = vld [vmem:[#allocation2 + $0x34c] sm:$0xf] }
  0x90   :  { %v2020_v1 = vor.u32 %v2438_v58, %v2017_v60  ;;  %v2426_v34 = vld [vmem:[#allocation2 + $0x32c] sm:$0xf]  ;;  %v1825_v48 = vld [vmem:[#allocation2 + $0x218] sm:$0xf0] }
  0x91   :  { %1434 = vmatpush.bf16.msra.mxu0 %v2160_v10  ;;  %1448 = vmatpush.bf16.msra.mxu1 %v2288_v11  ;;  %v2358_v10 = vld [vmem:[#allocation2 + $0x10c] sm:$0xf]  ;;  %v1697_v11 = vld [vmem:[#allocation2 + $0x118] sm:$0xf0] }
  0x92   :  { %1462 = vmatpush.bf16.msra.mxu2 %v1652_v12  ;;  %v2418_v12 = vld [vmem:[#allocation2 + $0x2ec] sm:$0xf] }
  0x93   :  { %1476 = vmatpush.bf16.msra.mxu3 %v1780_v16  ;;  %v2065_v16 = vld [vmem:[#allocation2 + $0x3f8] sm:$0xf0]  ;;  %v2390_v47 = vld [vmem:[#allocation2 + $0x20c] sm:$0xf] }
  0x94   :  { %v2068_v27 = vor.u32 %v2450_v14, %v2065_v16  ;;  %v2004_v14 = vor.u32 %v2434_v4, %v2001_v7  ;;  %v1857_v16 = vld [vmem:[#allocation2 + $0x258] sm:$0xf0]  ;;  %v2422_v49 = vld [vmem:[#allocation2 + $0x30c] sm:$0xf]  ;;  %v1828_v58 = vor.u32 %v2390_v47, %v1825_v48 }
  0x95   :  { %1435 = vmatpush.bf16.msra.mxu0 %v2144_v24  ;;  %1449 = vmatpush.bf16.msra.mxu1 %v2272_v25  ;;  %v2321_v24 = vld [vmem:[#allocation2 + $0x5f8] sm:$0xf0]  ;;  %v1700_v25 = vor.u32 %v2358_v10, %v1697_v11  ;;  %v2498_v10 = vld [vmem:[#allocation2 + $0x56c] sm:$0xf] }
  0x96   :  { %1463 = vmatpush.bf16.msra.mxu2 %v1636_v26  ;;  %v1940_v26 = vor.u32 %v2418_v12, %v1937_v13  ;;  %v2324_v32 = vor.u32 %v2514_v21, %v2321_v24  ;;  %v2257_v11 = vld [vmem:[#allocation2 + $0x578] sm:$0xf0]  ;;  %v2398_v13 = vld [vmem:[#allocation2 + $0x24c] sm:$0xf]  ;;  %v240_v24 = vld [vmem:[%s2682_s2] sm:$0xff] }
  0x97   :  { %1477 = vmatpush.bf16.msra.mxu3 %v1764_v30  ;;  %v1921_v30 = vld [vmem:[#allocation2 + $0x2d8] sm:$0xf0]  ;;  %v244_v31 = vperm.slane %v240_v24, 0 }
  0x98   :  { %v2113_v21 = vld [vmem:[#allocation2 + $0x458] sm:$0xf0] }
  0x99   :  { %1436 = vmatpush.bf16.msra.mxu0 %v2128_v37  ;;  %1450 = vmatpush.bf16.msra.mxu1 %v2256_v38  ;;  %v2510_v37 = vld [vmem:[#allocation2 + $0x5cc] sm:$0xf]  ;;  %v2305_v38 = vld [vmem:[#allocation2 + $0x5d8] sm:$0xf0] }
  0x9a   :  { %1464 = vmatpush.bf16.msra.mxu2 %v1620_v40  ;;  %v1924_v40 = vor.u32 %v2414_v29, %v1921_v30  ;;  %v2308_v46 = vor.u32 %v2510_v37, %v2305_v38  ;;  %v1988_v29 = vor.u32 %v2430_v17, %v1985_v18  ;;  %v1969_v37 = vld [vmem:[#allocation2 + $0x338] sm:$0xf0]  ;;  %v2458_v38 = vld [vmem:[#allocation2 + $0x42c] sm:$0xf] }
  0x9b   :  { %1478 = vmatpush.bf16.msra.mxu3 %v1748_v44  ;;  %v1905_v44 = vld [vmem:[#allocation2 + $0x2b8] sm:$0xf0]  ;;  %v1972_v45 = vor.u32 %v2426_v34, %v1969_v37 }
  0x9d   :  { %1437 = vmatpush.bf16.msra.mxu0 %v2112_v50  ;;  %1451 = vmatpush.bf16.msra.mxu1 %v2240_v51  ;;  %v2506_v50 = vld [vmem:[#allocation2 + $0x5ac] sm:$0xf]  ;;  %v2289_v51 = vld [vmem:[#allocation2 + $0x5b8] sm:$0xf0] }
  0x9e   :  { %1465 = vmatpush.bf16.msra.mxu2 %v1604_v52  ;;  %v1908_v52 = vor.u32 %v2410_v43, %v1905_v44  ;;  %v2292_v59 = vor.u32 %v2506_v50, %v2289_v51  ;;  %v2225_v43 = vld [vmem:[#allocation2 + $0x538] sm:$0xf0] }
  0x9f   :  { %1479 = vmatpush.bf16.msra.mxu3 %v1732_v56  ;;  %v1889_v56 = vld [vmem:[#allocation2 + $0x298] sm:$0xf0] }
  0xa0   :  { %v1892_v0 = vor.u32 %v2406_v55, %v1889_v56  ;;  %v2486_v55 = vld [vmem:[#allocation2 + $0x50c] sm:$0xf]  ;;  %v2209_v56 = vld [vmem:[#allocation2 + $0x518] sm:$0xf0] }
  0xa1   :  { %1438 = vmatpush.bf16.msra.mxu0 %v2096_v63  ;;  %1452 = vmatpush.bf16.msra.mxu1 %v2224_v2  ;;  %v2502_v63 = vld [vmem:[#allocation2 + $0x58c] sm:$0xf] }
  0xa2   :  { %1466 = vmatpush.bf16.msra.mxu2 %v1588_v3  ;;  %v2402_v2 = vld [vmem:[#allocation2 + $0x26c] sm:$0xf]  ;;  %v1873_v3 = vld [vmem:[#allocation2 + $0x278] sm:$0xf0] }
  0xa3   :  { %1480 = vmatpush.bf16.msra.mxu3 %v1716_v8  ;;  %v2466_v8 = vld [vmem:[#allocation2 + $0x46c] sm:$0xf]  ;;  %v1876_v12 = vor.u32 %v2402_v2, %v1873_v3 }
  0xa5   :  { %1439 = vmatpush.bf16.msra.mxu0 %v2080_v15  ;;  %1453 = vmatpush.bf16.msra.mxu1 %v2208_v19  ;;  %v2132_v15 = vor.u32 %v2466_v8, %v2129_v9  ;;  %v2260_v19 = vor.u32 %v2498_v10, %v2257_v11 }
  0xa6   :  { %1467 = vmatpush.bf16.msra.mxu2 %v1572_v20  ;;  %v2462_v20 = vld [vmem:[#allocation2 + $0x44c] sm:$0xf] }
  0xa7   :  { %1481 = vmatpush.bf16.msra.mxu3 %v1700_v25  ;;  %v2494_v25 = vld [vmem:[#allocation2 + $0x54c] sm:$0xf]  ;;  %v2116_v30 = vor.u32 %v2462_v20, %v2113_v21 }
  0xa8   :  { %1440 = vmatmul.bf16.vlgmr.msra.gmra.mxu0 %v2620_v35  ;;  %1454 = vmatmul.bf16.vlgmr.msra.gmra.mxu1 %v2622_v39 }
  0xa9   :  { %1488 = vmatpush.bf16.msrb.mxu0 %v1940_v26  ;;  %1502 = vmatpush.bf16.msrb.mxu1 %v2068_v27  ;;  %v2241_v26 = vld [vmem:[#allocation2 + $0x558] sm:$0xf0]  ;;  %v1860_v27 = vor.u32 %v2398_v13, %v1857_v16 }
  0xaa   :  { %1516 = vmatpush.bf16.msrb.mxu2 %v2196_v28  ;;  %1482 = vmatmul.bf16.vlgmr.msra.gmra.mxu3 %v2587_v6  ;;  %v2148_v6 = vor.u32 %v2470_v61, %v2145_v62  ;;  %v2394_v28 = vld [vmem:[#allocation2 + $0x22c] sm:$0xf]  ;;  %v2244_v36 = vor.u32 %v2494_v25, %v2241_v26 }
  0xab   :  { %1530 = vmatpush.bf16.msrb.mxu3 %v2324_v32  ;;  %1468 = vmatmul.bf16.vlgmr.msra.gmra.mxu2 %v2578_v57  ;;  %v2273_v57 = vld [vmem:[#allocation2 + $0x598] sm:$0xf0]  ;;  %v1217_v32 = vpop.f32.mrf.mxu0  ;;  %v1844_v44 = vor.u32 %v2394_v28, %v1841_v33 }
  0xac   :  { %v2276_v5 = vor.u32 %v2502_v63, %v2273_v57  ;;  %v1218_v50 = vadd.f32 %v1217_v32, %v244_v31  ;;  %v2212_v63 = vor.u32 %v2486_v55, %v2209_v56 }
  0xad   :  { %1489 = vmatpush.bf16.msrb.mxu0 %v1924_v40  ;;  %1503 = vmatpush.bf16.msrb.mxu1 %v2052_v41  ;;  %v2097_v40 = vld [vmem:[#allocation2 + $0x438] sm:$0xf0]  ;;  %v1231_v41 = vpop.f32.mrf.mxu1 }
  0xae   :  { %1517 = vmatpush.bf16.msrb.mxu2 %v2180_v42  ;;  %v2490_v42 = vld [vmem:[#allocation2 + $0x52c] sm:$0xf]  ;;  %v1232_v62 = vadd.f32 %v1231_v41, %v1218_v50 }
  0xaf   :  { %1531 = vmatpush.bf16.msrb.mxu3 %v2308_v46  ;;  %v2100_v46 = vor.u32 %v2458_v38, %v2097_v40  ;;  %v2228_v51 = vor.u32 %v2490_v42, %v2225_v43 }
  0xb1   :  { %1490 = vmatpush.bf16.msrb.mxu0 %v1908_v52  ;;  %1504 = vmatpush.bf16.msrb.mxu1 %v2036_v53  ;;  %v1953_v52 = vld [vmem:[#allocation2 + $0x318] sm:$0xf0]  ;;  %v2454_v53 = vld [vmem:[#allocation2 + $0x40c] sm:$0xf] }
  0xb2   :  { %1518 = vmatpush.bf16.msrb.mxu2 %v2164_v54  ;;  %v2081_v54 = vld [vmem:[#allocation2 + $0x418] sm:$0xf0] }
  0xb3   :  { %1532 = vmatpush.bf16.msrb.mxu3 %v2292_v59  ;;  %v1956_v59 = vor.u32 %v2422_v49, %v1953_v52  ;;  %v2084_v60 = vor.u32 %v2454_v53, %v2081_v54  ;;  %v1219_v57 = vpop.f32.mrf.mxu0 }
  0xb5   :  { %1491 = vmatpush.bf16.msrb.mxu0 %v1892_v0  ;;  %1505 = vmatpush.bf16.msrb.mxu1 %v2020_v1  ;;  %v1233_v0 = vpop.f32.mrf.mxu1  ;;  %v1259_v1 = vpop.f32.mrf.mxu3 }
  0xb6   :  { %1519 = vmatpush.bf16.msrb.mxu2 %v2148_v6  ;;  %v1245_v61 = vpop.f32.mrf.mxu2  ;;  %v1220_v6 = vadd.f32 %v1219_v57, %v244_v31 }
  0xb7   :  { %1533 = vmatpush.bf16.msrb.mxu3 %v2276_v5  ;;  %v1246_v2 = vadd.f32 %v1245_v61, %v1232_v62 }
  0xb8   :  { %v1234_v3 = vadd.f32 %v1233_v0, %v1220_v6 }
  0xb9   :  { %1492 = vmatpush.bf16.msrb.mxu0 %v1876_v12  ;;  %1506 = vmatpush.bf16.msrb.mxu1 %v2004_v14  ;;  %v1260_v4 = vadd.f32 %v1259_v1, %v1246_v2 }
  0xba   :  { %1520 = vmatpush.bf16.msrb.mxu2 %v2132_v15 }
  0xbb   :  { %1534 = vmatpush.bf16.msrb.mxu3 %v2260_v19 }
  0xbd   :  { %1493 = vmatpush.bf16.msrb.mxu0 %v1860_v27  ;;  %1507 = vmatpush.bf16.msrb.mxu1 %v1988_v29  ;;  %v1261_v11 = vpop.f32.mrf.mxu3 }
  0xbe   :  { %1521 = vmatpush.bf16.msrb.mxu2 %v2116_v30  ;;  %v1247_v5 = vpop.f32.mrf.mxu2 }
  0xbf   :  { %1535 = vmatpush.bf16.msrb.mxu3 %v2244_v36  ;;  %v1248_v10 = vadd.f32 %v1247_v5, %v1234_v3  ;;  %v243_v5 = vld [vmem:[%s2682_s2 + $0x18] sm:$0xff] }
  0xc1   :  { %1494 = vmatpush.bf16.msrb.mxu0 %v1844_v44  ;;  %1508 = vmatpush.bf16.msrb.mxu1 %v1972_v45  ;;  %v242_v44 = vld [vmem:[%s2682_s2 + $0x10] sm:$0xff] }
  0xc2   :  { %1522 = vmatpush.bf16.msrb.mxu2 %v2100_v46  ;;  %v246_v46 = vperm.slane %v242_v44, 0 }
  0xc3   :  { %1536 = vmatpush.bf16.msrb.mxu3 %v2228_v51 }
  0xc5   :  { %1495 = vmatpush.bf16.msrb.mxu0 %v1828_v58  ;;  %1509 = vmatpush.bf16.msrb.mxu1 %v1956_v59  ;;  %v1273_v7 = vpop.f32.mrf.mxu0  ;;  %v1287_v9 = vpop.f32.mrf.mxu1 }
  0xc6   :  { %1523 = vmatpush.bf16.msrb.mxu2 %v2084_v60  ;;  %v1274_v8 = vadd.f32 %v1273_v7, %v1260_v4 }
  0xc7   :  { %1537 = vmatpush.bf16.msrb.mxu3 %v2212_v63 }
  0xc8   :  { %1496 = vmatmul.bf16.vlgmr.msrb.gmra.mxu0 %v2602_v22  ;;  %1510 = vmatmul.bf16.vlgmr.msrb.gmra.mxu1 %v2604_v23  ;;  %v1288_v12 = vadd.f32 %v1287_v9, %v1274_v8  ;;  %v1262_v22 = vadd.f32 %v1261_v11, %v1248_v10  ;;  %v247_v9 = vperm.slane %v243_v5, 0 }
  0xc9   :  { %1524 = vmatmul.bf16.vlgmr.msrb.gmra.mxu2 %v2620_v35 }
  0xca   :  { %1538 = vmatmul.bf16.vlgmr.msrb.gmra.mxu3 %v2622_v39  ;;  %1544 = vst [vmem:[%s2683_s3] sm:$0xff] %v1288_v12  ;;  %v241_v39 = vld [vmem:[%s2682_s2 + $0x8] sm:$0xff] }
  0xcb   :  { %v245_v17 = vperm.slane %v241_v39, 0 }
  0xcd   :  { %v1275_v13 = vpop.f32.mrf.mxu0  ;;  %v1289_v14 = vpop.f32.mrf.mxu1 }
  0xce   :  { %v1276_v23 = vadd.f32 %v1275_v13, %v1262_v22  ;;  %v1301_v15 = vpop.f32.mrf.mxu2  ;;  %v1315_v16 = vpop.f32.mrf.mxu3 }
  0xcf   :  { %v1302_v18 = vadd.f32 %v1301_v15, %v245_v17 }
  0xd0   :  { %v1290_v35 = vadd.f32 %v1289_v14, %v1276_v23 }
  0xd1   :  { %v1316_v19 = vadd.f32 %v1315_v16, %v1302_v18 }
  0xd2   :  { %1548 = vst [vmem:[%s2683_s3 + $0x20] sm:$0xff] %v1290_v35 }
  0xd6   :  { %v1303_v20 = vpop.f32.mrf.mxu2  ;;  %v1317_v21 = vpop.f32.mrf.mxu3 }
  0xd7   :  { %v1304_v27 = vadd.f32 %v1303_v20, %v245_v17 }
  0xd9   :  { %v1318_v29 = vadd.f32 %v1317_v21, %v1304_v27 }
  0xe5   :  { %v1329_v24 = vpop.f32.mrf.mxu0  ;;  %v1343_v26 = vpop.f32.mrf.mxu1 }
  0xe6   :  { %v1330_v25 = vadd.f32 %v1329_v24, %v1316_v19 }
  0xe8   :  { %v1344_v28 = vadd.f32 %v1343_v26, %v1330_v25 }
  0xed   :  { %v1331_v32 = vpop.f32.mrf.mxu0  ;;  %v1371_v33 = vpop.f32.mrf.mxu3 }
  0xee   :  { %v1357_v30 = vpop.f32.mrf.mxu2  ;;  %v1332_v34 = vadd.f32 %v1331_v32, %v1318_v29  ;;  %v1345_v37 = vpop.f32.mrf.mxu1 }
  0xef   :  { %v1358_v31 = vadd.f32 %v1357_v30, %v1344_v28 }
  0xf0   :  { %v1346_v38 = vadd.f32 %v1345_v37, %v1332_v34 }
  0xf1   :  { %v1372_v36 = vadd.f32 %v1371_v33, %v1358_v31 }
  0xf3   :  { %1545 = vst [vmem:[%s2683_s3 + $0x8] sm:$0xff] %v1372_v36 }
  0xf5   :  { %v1373_v42 = vpop.f32.mrf.mxu3 }
  0xf6   :  { %v1359_v40 = vpop.f32.mrf.mxu2 }
  0xf7   :  { %v1360_v41 = vadd.f32 %v1359_v40, %v1346_v38 }
  0xf9   :  { %v1374_v43 = vadd.f32 %v1373_v42, %v1360_v41 }
  0xfb   :  { %1549 = vst [vmem:[%s2683_s3 + $0x28] sm:$0xff] %v1374_v43 }
 0x105   :  { %v1385_v45 = vpop.f32.mrf.mxu0  ;;  %v1399_v47 = vpop.f32.mrf.mxu1 }
 0x106   :  { %v1386_v48 = vadd.f32 %v1385_v45, %v246_v46 }
 0x108   :  { %v1400_v50 = vadd.f32 %v1399_v47, %v1386_v48 }
 0x10d   :  { %v1387_v51 = vpop.f32.mrf.mxu0  ;;  %v1401_v52 = vpop.f32.mrf.mxu1 }
 0x10e   :  { %v1413_v49 = vpop.f32.mrf.mxu2  ;;  %v1427_v53 = vpop.f32.mrf.mxu3  ;;  %v1388_v54 = vadd.f32 %v1387_v51, %v246_v46 }
 0x10f   :  { %v1414_v55 = vadd.f32 %v1413_v49, %v1400_v50 }
 0x110   :  { %v1402_v56 = vadd.f32 %v1401_v52, %v1388_v54 }
 0x111   :  { %v1428_v58 = vadd.f32 %v1427_v53, %v1414_v55 }
 0x116   :  { %v1415_v59 = vpop.f32.mrf.mxu2  ;;  %v1429_v57 = vpop.f32.mrf.mxu3 }
 0x117   :  { %v1416_v63 = vadd.f32 %v1415_v59, %v1402_v56 }
 0x119   :  { %v1430_v1 = vadd.f32 %v1429_v57, %v1416_v63 }
 0x125   :  { %v1441_v60 = vpop.f32.mrf.mxu0  ;;  %v1455_v62 = vpop.f32.mrf.mxu1 }
 0x126   :  { %v1442_v61 = vadd.f32 %v1441_v60, %v1428_v58 }
 0x128   :  { %v1456_v0 = vadd.f32 %v1455_v62, %v1442_v61 }
 0x12a   :  { %1546 = vst [vmem:[%s2683_s3 + $0x10] sm:$0xff] %v1456_v0 }
 0x12d   :  { %v1443_v6 = vpop.f32.mrf.mxu0  ;;  %v1457_v3 = vpop.f32.mrf.mxu1 }
 0x12e   :  { %v1444_v2 = vadd.f32 %v1443_v6, %v1430_v1  ;;  %v1469_v7 = vpop.f32.mrf.mxu2  ;;  %v1483_v8 = vpop.f32.mrf.mxu3 }
 0x12f   :  { %v1470_v10 = vadd.f32 %v1469_v7, %v247_v9 }
 0x130   :  { %v1458_v4 = vadd.f32 %v1457_v3, %v1444_v2 }
 0x131   :  { %v1484_v12 = vadd.f32 %v1483_v8, %v1470_v10 }
 0x132   :  { %1550 = vst [vmem:[%s2683_s3 + $0x30] sm:$0xff] %v1458_v4 }
 0x136   :  { %v1471_v11 = vpop.f32.mrf.mxu2  ;;  %v1485_v22 = vpop.f32.mrf.mxu3 }
 0x137   :  { %v1472_v35 = vadd.f32 %v1471_v11, %v247_v9 }
 0x139   :  { %v1486_v16 = vadd.f32 %v1485_v22, %v1472_v35 }
 0x145   :  { %v1497_v13 = vpop.f32.mrf.mxu0  ;;  %v1511_v14 = vpop.f32.mrf.mxu1 }
 0x146   :  { %v1498_v23 = vadd.f32 %v1497_v13, %v1484_v12 }
 0x148   :  { %v1512_v39 = vadd.f32 %v1511_v14, %v1498_v23 }
 0x14c   :  { %v1525_v15 = vpop.f32.mrf.mxu2 }
 0x14d   :  { %v1526_v17 = vadd.f32 %v1525_v15, %v1512_v39  ;;  %v1539_v18 = vpop.f32.mrf.mxu3  ;;  %v1499_v19 = vpop.f32.mrf.mxu0 }
 0x14e   :  { %v1500_v21 = vadd.f32 %v1499_v19, %v1486_v16  ;;  %v1513_v24 = vpop.f32.mrf.mxu1 }
 0x14f   :  { %v1540_v20 = vadd.f32 %v1539_v18, %v1526_v17 }
 0x150   :  { %v1514_v25 = vadd.f32 %v1513_v24, %v1500_v21 }
 0x151   :  { %1547 = vst [vmem:[%s2683_s3 + $0x18] sm:$0xff] %v1540_v20 }
 0x154   :  { %v1527_v26 = vpop.f32.mrf.mxu2 }
 0x155   :  { %v1528_v27 = vadd.f32 %v1527_v26, %v1514_v25  ;;  %v1541_v28 = vpop.f32.mrf.mxu3 }
 0x157   :  { %v1542_v29 = vadd.f32 %v1541_v28, %v1528_v27 }
 0x159   :  { %1551 = vst [vmem:[%s2683_s3 + $0x38] sm:$0xff] %v1542_v29 }
 0x15a   :  { %1556 = vsyncpa [#allocation3], 1 }

</bundles_post_ra>
